<compile_context>
chip_gen: v5e
topology: v5e:2x2
jax: 0.10.0
libtpu: 0.0.40
codegen_flags: <defaults>
</compile_context>

<pallas_src>
import functools
import numpy as np
import jax
import jax.numpy as jnp
from jax.experimental import pallas as pl
from jax.experimental.pallas import tpu as pltpu

# -------------------- model hyper-parameters (small, synthetic) --------------------
B = 2          # batch
S = 8          # sequence length
D_MODEL = 32   # d_model
D_K = 8        # per-head key dim
D_V = 8        # per-head value dim
H = 4          # heads (H * D_K == D_MODEL, as in the reference config)
D_FF = 64      # feed-forward hidden dim
N_LAYERS = 2   # number of encoder layers
PADDING_IDX = 0
LN_EPS = 1e-5          # torch.nn.LayerNorm default
MASK_NEG = -1e30       # large finite negative instead of -inf (avoids NaN path)


# -------------------- fused all-layers Pallas kernel --------------------
def fused_encoder_kernel(
    x_ref, bias_ref,
    wqkv_ref, bqkv_ref, wo_ref, bo_ref, ln1g_ref, ln1b_ref,
    w1_ref, b1_ref, w2_ref, b2_ref, ln2g_ref, ln2b_ref,
    out_ref, act_ref,
    *, batch, seq, h, d_k, d_v,
):
    # Layer 0: load the input activations into the persistent VMEM scratch.
    @pl.when(pl.program_id(0) == 0)
    def _():
        act_ref[...] = x_ref[...]

    x = act_ref[...]            # (B*S, D) current activation
    bias = bias_ref[...]        # (B, 1, S) additive key mask (0 / MASK_NEG)

    # ---- fused Q/K/V projection: one MXU push ----
    qkv = jnp.dot(x, wqkv_ref[0], preferred_element_type=jnp.float32) + bqkv_ref[0]
    hk = h * d_k
    q = qkv[:, :hk]                         # (B*S, H*d_k)
    k = qkv[:, hk:2 * hk]                   # (B*S, H*d_k)
    v = qkv[:, 2 * hk:2 * hk + h * d_v]     # (B*S, H*d_v)

    wo = wo_ref[0]                          # (H*d_v, D)
    scale = 1.0 / float(np.sqrt(d_k))

    # ---- per-head attention, batched over B with 3-D contractions.
    # No explicit .T (dot_general contracts last dims) and no concat (output
    # projection accumulated as a sum of per-head matmuls).
    att_out = None
    for hi in range(h):
        qh = q[:, hi * d_k:(hi + 1) * d_k].reshape(batch, seq, d_k)
        kh = k[:, hi * d_k:(hi + 1) * d_k].reshape(batch, seq, d_k)
        vh = v[:, hi * d_v:(hi + 1) * d_v].reshape(batch, seq, d_v)

        att = jnp.einsum('bqd,bkd->bqk', qh, kh,
                         preferred_element_type=jnp.float32) * scale   # (B,S,S)
        att = att + bias
        att = att - jnp.max(att, axis=-1, keepdims=True)
        e = jnp.exp(att)
        p = e / jnp.sum(e, axis=-1, keepdims=True)

        oh = jnp.einsum('bqk,bkd->bqd', p, vh,
                        preferred_element_type=jnp.float32)            # (B,S,d_v)
        contrib = jnp.dot(oh.reshape(batch * seq, d_v),
                          wo[hi * d_v:(hi + 1) * d_v, :],
                          preferred_element_type=jnp.float32)          # (B*S, D)
        att_out = contrib if att_out is None else att_out + contrib
    att_out = att_out + bo_ref[0]

    # ---- residual + LayerNorm 1 ----
    y = x + att_out
    mu = jnp.mean(y, axis=-1, keepdims=True)
    var = jnp.mean((y - mu) * (y - mu), axis=-1, keepdims=True)
    y = (y - mu) * jax.lax.rsqrt(var + LN_EPS) * ln1g_ref[0] + ln1b_ref[0]

    # ---- position-wise feed-forward ----
    h1 = jnp.dot(y, w1_ref[0], preferred_element_type=jnp.float32) + b1_ref[0]
    h1 = jnp.maximum(h1, 0.0)
    h2 = jnp.dot(h1, w2_ref[0], preferred_element_type=jnp.float32) + b2_ref[0]

    # ---- residual + LayerNorm 2 ----
    z = y + h2
    mu2 = jnp.mean(z, axis=-1, keepdims=True)
    var2 = jnp.mean((z - mu2) * (z - mu2), axis=-1, keepdims=True)
    z = (z - mu2) * jax.lax.rsqrt(var2 + LN_EPS) * ln2g_ref[0] + ln2b_ref[0]

    # keep activation resident for the next layer; emit this layer's output.
    act_ref[...] = z
    out_ref[0] = z.astype(out_ref.dtype)


# -------------------- MultiLevelEncoder forward (wrapper) --------------------
def multi_level_encoder(x, params, padding_idx=PADDING_IDX):
    """x: (B, S, D). params: list of 12 per-layer-stacked weight arrays."""
    Bb, Ss, Dd = x.shape
    # attention_mask = (sum(input, -1) == padding_idx).unsqueeze(1).unsqueeze(1)
    mask = (jnp.sum(x, axis=-1) == padding_idx)                             # (B, S)
    bias = jnp.where(mask, MASK_NEG, 0.0).astype(jnp.float32)[:, None, :]   # (B, 1, S)
    x2 = x.reshape(Bb * Ss, Dd)

    kernel = functools.partial(fused_encoder_kernel,
                               batch=Bb, seq=Ss, h=H, d_k=D_K, d_v=D_V)

    weight_specs = [pl.BlockSpec((1,) + tuple(p.shape[1:]), lambda l: (l, 0, 0))
                    for p in params]
    in_specs = (
        [pl.BlockSpec((Bb * Ss, Dd), lambda l: (0, 0)),      # x (only read at layer 0)
         pl.BlockSpec((Bb, 1, Ss), lambda l: (0, 0, 0))]     # mask bias
        + weight_specs                                       # per-layer weight slabs
    )

    flops = N_LAYERS * (
        2 * Bb * Ss * Dd * (2 * H * D_K + H * D_V)     # fused QKV projection
        + 2 * Bb * H * Ss * Ss * D_K                   # scores
        + 2 * Bb * H * Ss * Ss * D_V                   # p @ v
        + 2 * Bb * Ss * (H * D_V) * Dd                 # output projection
        + 2 * Bb * Ss * Dd * D_FF + 2 * Bb * Ss * D_FF * Dd)  # FFN
    transcendentals = N_LAYERS * (Bb * H * Ss * Ss + 2 * Bb * Ss)
    bytes_accessed = int(x2.size * 4 + bias.size * 4
                         + sum(int(p.size) * 4 for p in params)
                         + N_LAYERS * Bb * Ss * Dd * 4)

    outs_flat = pl.pallas_call(
        kernel,
        out_shape=jax.ShapeDtypeStruct((N_LAYERS, Bb * Ss, Dd), jnp.float32),
        grid_spec=pltpu.PrefetchScalarGridSpec(
            num_scalar_prefetch=0,
            grid=(N_LAYERS,),                                   # loop over layers
            in_specs=in_specs,
            out_specs=pl.BlockSpec((1, Bb * Ss, Dd), lambda l: (l, 0, 0)),
            scratch_shapes=[pltpu.VMEM((Bb * Ss, Dd), jnp.float32)],  # resident act
        ),
        compiler_params=pltpu.CompilerParams(dimension_semantics=("arbitrary",)),
        cost_estimate=pl.CostEstimate(flops=flops,
                                      transcendentals=transcendentals,
                                      bytes_accessed=bytes_accessed),
    )(x2, bias, *params)

    outs = outs_flat.reshape(N_LAYERS, Bb, Ss, Dd).transpose(1, 0, 2, 3)  # (B, N, S, D)
    attention_mask = mask[:, None, None, :]                               # (B, 1, 1, S)
    return outs, attention_mask
    # TODO(synk): on v7x a second "parallel" batch grid axis (or core_map) could use
    # both TensorCores; omitted here since B=2 blocks are tiny and layers are serial.


# -------------------- pure-JAX reference (same math, for the sanity check) ---------
def _ref_encoder(x, params, padding_idx=PADDING_IDX):
    (wqkv, bqkv, wo, bo, g1, be1, w1, b1, w2, b2, g2, be2) = params
    Bb, Ss, Dd = x.shape
    mask = (jnp.sum(x, axis=-1) == padding_idx)
    bias = jnp.where(mask, MASK_NEG, 0.0).astype(jnp.float32)[:, None, None, :]
    hk = H * D_K
    outs, out = [], x
    for l in range(N_LAYERS):
        qkv = out @ wqkv[l] + bqkv[l]
        q = qkv[..., :hk].reshape(Bb, Ss, H, D_K).transpose(0, 2, 1, 3)
        k = qkv[..., hk:2 * hk].reshape(Bb, Ss, H, D_K).transpose(0, 2, 1, 3)
        v = qkv[..., 2 * hk:].reshape(Bb, Ss, H, D_V).transpose(0, 2, 1, 3)
        att = jnp.einsum('bhqd,bhkd->bhqk', q, k) / np.sqrt(D_K) + bias
        p = jax.nn.softmax(att, axis=-1)
        o = jnp.einsum('bhqk,bhkd->bhqd', p, v).transpose(0, 2, 1, 3).reshape(Bb, Ss, H * D_V)
        o = o @ wo[l] + bo[l]
        y = out + o
        y = (y - y.mean(-1, keepdims=True)) / jnp.sqrt(y.var(-1, keepdims=True) + LN_EPS) * g1[l] + be1[l]
        f = jnp.maximum(y @ w1[l] + b1[l], 0.0) @ w2[l] + b2[l]
        z = y + f
        z = (z - z.mean(-1, keepdims=True)) / jnp.sqrt(z.var(-1, keepdims=True) + LN_EPS) * g2[l] + be2[l]
        out = z
        outs.append(out[:, None])
    return jnp.concatenate(outs, axis=1), mask[:, None, None, :]


# -------------------- deterministic parameter init (layer-stacked) --------------------
def init_params(key):
    def one_layer(k):
        ks = jax.random.split(k, 8)

        def lin(kw, kb, fin, fout):
            w = jax.random.normal(kw, (fin, fout), jnp.float32) * (1.0 / np.sqrt(fin))
            b = jax.random.normal(kb, (1, fout), jnp.float32) * 0.02
            return w, b

        wqkv, bqkv = lin(ks[0], ks[1], D_MODEL, 2 * H * D_K + H * D_V)  # fused Q|K|V
        wo, bo = lin(ks[2], ks[3], H * D_V, D_MODEL)
        w1, b1 = lin(ks[4], ks[5], D_MODEL, D_FF)
        w2, b2 = lin(ks[6], ks[7], D_FF, D_MODEL)
        ln1g = jnp.ones((1, D_MODEL), jnp.float32)
        ln1b = jnp.zeros((1, D_MODEL), jnp.float32)
        ln2g = jnp.ones((1, D_MODEL), jnp.float32)
        ln2b = jnp.zeros((1, D_MODEL), jnp.float32)
        return [wqkv, bqkv, wo, bo, ln1g, ln1b, w1, b1, w2, b2, ln2g, ln2b]

    layers = [one_layer(k) for k in jax.random.split(key, N_LAYERS)]
    # stack each of the 12 params along a leading layer axis
    return [jnp.stack([layers[l][i] for l in range(N_LAYERS)], axis=0) for i in range(12)]


if __name__ == "__main__":
    root = jax.random.PRNGKey(0)
    kx, kp = jax.random.split(root)

    # input features (B, S, D); force one padded token per batch element so the
    # attention mask (sum over features == padding_idx == 0) is exercised.
    x = jax.random.normal(kx, (B, S, D_MODEL), jnp.float32)
    x = x.at[:, -1, :].set(0.0)

    params = init_params(kp)

    outs, attn_mask = multi_level_encoder(x, params)
    outs = jax.block_until_ready(outs)
    attn_mask = jax.block_until_ready(attn_mask)

    assert outs.shape == (B, N_LAYERS, S, D_MODEL)
    assert attn_mask.shape == (B, 1, 1, S)

    # sanity check against a pure-JAX reference of the same math
    ref_outs, ref_mask = _ref_encoder(x, params)
    np.testing.assert_allclose(np.asarray(outs), np.asarray(ref_outs), rtol=1e-4, atol=1e-4)
    np.testing.assert_array_equal(np.asarray(attn_mask), np.asarray(ref_mask))

    print("KERNEL_OK")
</pallas_src>

<mosaic_0001>
module attributes {stable_mosaic.version = 11 : i64} {
  func.func @fused_encoder_kernel(%arg0: i32, %arg1: memref<16x32xf32, #tpu.memory_space<vmem>>, %arg2: memref<2x1x8xf32, #tpu.memory_space<vmem>>, %arg3: memref<1x32x96xf32, #tpu.memory_space<vmem>>, %arg4: memref<1x1x96xf32, #tpu.memory_space<vmem>>, %arg5: memref<1x32x32xf32, #tpu.memory_space<vmem>>, %arg6: memref<1x1x32xf32, #tpu.memory_space<vmem>>, %arg7: memref<1x1x32xf32, #tpu.memory_space<vmem>>, %arg8: memref<1x1x32xf32, #tpu.memory_space<vmem>>, %arg9: memref<1x32x64xf32, #tpu.memory_space<vmem>>, %arg10: memref<1x1x64xf32, #tpu.memory_space<vmem>>, %arg11: memref<1x64x32xf32, #tpu.memory_space<vmem>>, %arg12: memref<1x1x32xf32, #tpu.memory_space<vmem>>, %arg13: memref<1x1x32xf32, #tpu.memory_space<vmem>>, %arg14: memref<1x1x32xf32, #tpu.memory_space<vmem>>, %arg15: memref<1x16x32xf32, #tpu.memory_space<vmem>>, %arg16: memref<16x32xf32, #tpu.memory_space<vmem>>) attributes {dimension_semantics = [#tpu.dimension_semantics<arbitrary>], iteration_bounds = array<i64: 2>, scalar_prefetch = 0 : i64, scratch_operands = 1 : i64, tpu.core_type = #tpu.core_type<tc>, window_params = [{pipeline_mode = #tpu.pipeline_mode<synchronous>, transform_indices = @transform_0, window_bounds = array<i64: 16, 32>}, {pipeline_mode = #tpu.pipeline_mode<synchronous>, transform_indices = @transform_1, window_bounds = array<i64: 2, 1, 8>}, {transform_indices = @transform_2, window_bounds = array<i64: 1, 32, 96>}, {transform_indices = @transform_3, window_bounds = array<i64: 1, 1, 96>}, {transform_indices = @transform_4, window_bounds = array<i64: 1, 32, 32>}, {transform_indices = @transform_5, window_bounds = array<i64: 1, 1, 32>}, {transform_indices = @transform_6, window_bounds = array<i64: 1, 1, 32>}, {transform_indices = @transform_7, window_bounds = array<i64: 1, 1, 32>}, {transform_indices = @transform_8, window_bounds = array<i64: 1, 32, 64>}, {transform_indices = @transform_9, window_bounds = array<i64: 1, 1, 64>}, {transform_indices = @transform_10, window_bounds = array<i64: 1, 64, 32>}, {transform_indices = @transform_11, window_bounds = array<i64: 1, 1, 32>}, {transform_indices = @transform_12, window_bounds = array<i64: 1, 1, 32>}, {transform_indices = @transform_13, window_bounds = array<i64: 1, 1, 32>}, {transform_indices = @transform_14, window_bounds = array<i64: 1, 16, 32>}]} {
    %c0_i32 = arith.constant 0 : i32
    %0 = arith.cmpi eq, %arg0, %c0_i32 : i32
    %1 = arith.extui %0 : i1 to i32
    %c0_i32_0 = arith.constant 0 : i32
    %2 = arith.cmpi ne, %1, %c0_i32_0 : i32
    scf.if %2 {
      %c0_83 = arith.constant 0 : index
      %c0_84 = arith.constant 0 : index
      %198 = vector.load %arg1[%c0_83, %c0_84] : memref<16x32xf32, #tpu.memory_space<vmem>>, vector<16x32xf32>
      %c0_85 = arith.constant 0 : index
      %c0_86 = arith.constant 0 : index
      %199 = vector.load %arg16[%c0_85, %c0_86] : memref<16x32xf32, #tpu.memory_space<vmem>>, vector<16x32xf32>
      tpu.vector_store %arg16[%c0_85, %c0_86], %198 {strides = array<i32>} : memref<16x32xf32, #tpu.memory_space<vmem>>, vector<16x32xf32>,
    } else {
    }
    %c0 = arith.constant 0 : index
    %c0_1 = arith.constant 0 : index
    %3 = vector.load %arg16[%c0, %c0_1] : memref<16x32xf32, #tpu.memory_space<vmem>>, vector<16x32xf32>
    %c0_2 = arith.constant 0 : index
    %c0_3 = arith.constant 0 : index
    %c0_4 = arith.constant 0 : index
    %4 = vector.load %arg2[%c0_2, %c0_3, %c0_4] : memref<2x1x8xf32, #tpu.memory_space<vmem>>, vector<2x1x8xf32>
    %c0_5 = arith.constant 0 : index
    %c0_6 = arith.constant 0 : index
    %c0_7 = arith.constant 0 : index
    %5 = vector.load %arg3[%c0_5, %c0_6, %c0_7] : memref<1x32x96xf32, #tpu.memory_space<vmem>>, vector<1x32x96xf32>
    %6 = vector.shape_cast %5 : vector<1x32x96xf32> to vector<32x96xf32>
    %cst = arith.constant dense<0.000000e+00> : vector<16x96xf32>
    %7 = tpu.matmul %3, %6, %cst {dimension_numbers = #tpu.dot_dimension_numbers<[1], [0], [0], [1], [0, 0, 1, 1], [], []>} : vector<16x32xf32>, vector<32x96xf32>, vector<16x96xf32> -> vector<16x96xf32>
    %c0_8 = arith.constant 0 : index
    %c0_9 = arith.constant 0 : index
    %c0_10 = arith.constant 0 : index
    %8 = vector.load %arg4[%c0_8, %c0_9, %c0_10] : memref<1x1x96xf32, #tpu.memory_space<vmem>>, vector<1x1x96xf32>
    %9 = vector.shape_cast %8 : vector<1x1x96xf32> to vector<1x96xf32>
    %10 = vector.broadcast %9 : vector<1x96xf32> to vector<16x96xf32>
    %11 = arith.addf %7, %10 : vector<16x96xf32>
    %12 = vector.extract_strided_slice %11 {offsets = [0, 0], sizes = [16, 32], strides = [1, 1]} : vector<16x96xf32> to vector<16x32xf32>
    %13 = vector.extract_strided_slice %11 {offsets = [0, 32], sizes = [16, 32], strides = [1, 1]} : vector<16x96xf32> to vector<16x32xf32>
    %14 = vector.extract_strided_slice %11 {offsets = [0, 64], sizes = [16, 32], strides = [1, 1]} : vector<16x96xf32> to vector<16x32xf32>
    %c0_11 = arith.constant 0 : index
    %c0_12 = arith.constant 0 : index
    %c0_13 = arith.constant 0 : index
    %15 = vector.load %arg5[%c0_11, %c0_12, %c0_13] : memref<1x32x32xf32, #tpu.memory_space<vmem>>, vector<1x32x32xf32>
    %16 = vector.shape_cast %15 : vector<1x32x32xf32> to vector<32x32xf32>
    %17 = vector.extract_strided_slice %12 {offsets = [0, 0], sizes = [16, 8], strides = [1, 1]} : vector<16x32xf32> to vector<16x8xf32>
    %18 = vector.shape_cast %17 : vector<16x8xf32> to vector<2x8x8xf32>
    %19 = vector.extract_strided_slice %13 {offsets = [0, 0], sizes = [16, 8], strides = [1, 1]} : vector<16x32xf32> to vector<16x8xf32>
    %20 = vector.shape_cast %19 : vector<16x8xf32> to vector<2x8x8xf32>
    %21 = vector.extract_strided_slice %14 {offsets = [0, 0], sizes = [16, 8], strides = [1, 1]} : vector<16x32xf32> to vector<16x8xf32>
    %22 = vector.shape_cast %21 : vector<16x8xf32> to vector<2x8x8xf32>
    "tpu.trace_start"() <{level = 10 : i32, message = "bqd,bkd->bqk"}> : () -> ()
    %cst_14 = arith.constant dense<0.000000e+00> : vector<2x8x8xf32>
    %23 = tpu.matmul %18, %20, %cst_14 {dimension_numbers = #tpu.dot_dimension_numbers<[2], [2], [1], [1], [0, 0, 0, 1, 1, 1], [0], [0]>} : vector<2x8x8xf32>, vector<2x8x8xf32>, vector<2x8x8xf32> -> vector<2x8x8xf32>
    "tpu.trace_stop"() : () -> ()
    %cst_15 = arith.constant 0.353553385 : f32
    %24 = vector.broadcast %cst_15 : f32 to vector<2x8x8xf32>
    %25 = arith.mulf %23, %24 : vector<2x8x8xf32>
    %26 = vector.broadcast %4 : vector<2x1x8xf32> to vector<2x8x8xf32>
    %27 = arith.addf %25, %26 : vector<2x8x8xf32>
    %cst_16 = arith.constant dense<0xFF800000> : vector<2x8xf32>
    %28 = vector.multi_reduction <maximumf>, %27, %cst_16 [2] : vector<2x8x8xf32> to vector<2x8xf32>
    %29 = vector.shape_cast %28 : vector<2x8xf32> to vector<2x8x1xf32>
    %30 = vector.broadcast %29 : vector<2x8x1xf32> to vector<2x8x8xf32>
    %31 = arith.subf %27, %30 : vector<2x8x8xf32>
    %32 = math.exp %31 : vector<2x8x8xf32>
    %cst_17 = arith.constant dense<0.000000e+00> : vector<2x8xf32>
    %33 = vector.multi_reduction <add>, %32, %cst_17 [2] : vector<2x8x8xf32> to vector<2x8xf32>
    %34 = vector.shape_cast %33 : vector<2x8xf32> to vector<2x8x1xf32>
    %35 = vector.broadcast %34 : vector<2x8x1xf32> to vector<2x8x8xf32>
    %36 = arith.divf %32, %35 : vector<2x8x8xf32>
    "tpu.trace_start"() <{level = 10 : i32, message = "bqk,bkd->bqd"}> : () -> ()
    %cst_18 = arith.constant dense<0.000000e+00> : vector<2x8x8xf32>
    %37 = tpu.matmul %36, %22, %cst_18 {dimension_numbers = #tpu.dot_dimension_numbers<[2], [1], [1], [2], [0, 0, 0, 1, 1, 2], [0], [0]>} : vector<2x8x8xf32>, vector<2x8x8xf32>, vector<2x8x8xf32> -> vector<2x8x8xf32>
    "tpu.trace_stop"() : () -> ()
    %38 = vector.shape_cast %37 : vector<2x8x8xf32> to vector<16x8xf32>
    %39 = vector.extract_strided_slice %16 {offsets = [0, 0], sizes = [8, 32], strides = [1, 1]} : vector<32x32xf32> to vector<8x32xf32>
    %cst_19 = arith.constant dense<0.000000e+00> : vector<16x32xf32>
    %40 = tpu.matmul %38, %39, %cst_19 {dimension_numbers = #tpu.dot_dimension_numbers<[1], [0], [0], [1], [0, 0, 1, 1], [], []>} : vector<16x8xf32>, vector<8x32xf32>, vector<16x32xf32> -> vector<16x32xf32>
    %41 = vector.extract_strided_slice %12 {offsets = [0, 8], sizes = [16, 8], strides = [1, 1]} : vector<16x32xf32> to vector<16x8xf32>
    %42 = vector.shape_cast %41 : vector<16x8xf32> to vector<2x8x8xf32>
    %43 = vector.extract_strided_slice %13 {offsets = [0, 8], sizes = [16, 8], strides = [1, 1]} : vector<16x32xf32> to vector<16x8xf32>
    %44 = vector.shape_cast %43 : vector<16x8xf32> to vector<2x8x8xf32>
    %45 = vector.extract_strided_slice %14 {offsets = [0, 8], sizes = [16, 8], strides = [1, 1]} : vector<16x32xf32> to vector<16x8xf32>
    %46 = vector.shape_cast %45 : vector<16x8xf32> to vector<2x8x8xf32>
    "tpu.trace_start"() <{level = 10 : i32, message = "bqd,bkd->bqk"}> : () -> ()
    %cst_20 = arith.constant dense<0.000000e+00> : vector<2x8x8xf32>
    %47 = tpu.matmul %42, %44, %cst_20 {dimension_numbers = #tpu.dot_dimension_numbers<[2], [2], [1], [1], [0, 0, 0, 1, 1, 1], [0], [0]>} : vector<2x8x8xf32>, vector<2x8x8xf32>, vector<2x8x8xf32> -> vector<2x8x8xf32>
    "tpu.trace_stop"() : () -> ()
    %cst_21 = arith.constant 0.353553385 : f32
    %48 = vector.broadcast %cst_21 : f32 to vector<2x8x8xf32>
    %49 = arith.mulf %47, %48 : vector<2x8x8xf32>
    %50 = vector.broadcast %4 : vector<2x1x8xf32> to vector<2x8x8xf32>
    %51 = arith.addf %49, %50 : vector<2x8x8xf32>
    %cst_22 = arith.constant dense<0xFF800000> : vector<2x8xf32>
    %52 = vector.multi_reduction <maximumf>, %51, %cst_22 [2] : vector<2x8x8xf32> to vector<2x8xf32>
    %53 = vector.shape_cast %52 : vector<2x8xf32> to vector<2x8x1xf32>
    %54 = vector.broadcast %53 : vector<2x8x1xf32> to vector<2x8x8xf32>
    %55 = arith.subf %51, %54 : vector<2x8x8xf32>
    %56 = math.exp %55 : vector<2x8x8xf32>
    %cst_23 = arith.constant dense<0.000000e+00> : vector<2x8xf32>
    %57 = vector.multi_reduction <add>, %56, %cst_23 [2] : vector<2x8x8xf32> to vector<2x8xf32>
    %58 = vector.shape_cast %57 : vector<2x8xf32> to vector<2x8x1xf32>
    %59 = vector.broadcast %58 : vector<2x8x1xf32> to vector<2x8x8xf32>
    %60 = arith.divf %56, %59 : vector<2x8x8xf32>
    "tpu.trace_start"() <{level = 10 : i32, message = "bqk,bkd->bqd"}> : () -> ()
    %cst_24 = arith.constant dense<0.000000e+00> : vector<2x8x8xf32>
    %61 = tpu.matmul %60, %46, %cst_24 {dimension_numbers = #tpu.dot_dimension_numbers<[2], [1], [1], [2], [0, 0, 0, 1, 1, 2], [0], [0]>} : vector<2x8x8xf32>, vector<2x8x8xf32>, vector<2x8x8xf32> -> vector<2x8x8xf32>
    "tpu.trace_stop"() : () -> ()
    %62 = vector.shape_cast %61 : vector<2x8x8xf32> to vector<16x8xf32>
    %63 = vector.extract_strided_slice %16 {offsets = [8, 0], sizes = [8, 32], strides = [1, 1]} : vector<32x32xf32> to vector<8x32xf32>
    %cst_25 = arith.constant dense<0.000000e+00> : vector<16x32xf32>
    %64 = tpu.matmul %62, %63, %cst_25 {dimension_numbers = #tpu.dot_dimension_numbers<[1], [0], [0], [1], [0, 0, 1, 1], [], []>} : vector<16x8xf32>, vector<8x32xf32>, vector<16x32xf32> -> vector<16x32xf32>
    %65 = arith.addf %40, %64 : vector<16x32xf32>
    %66 = vector.extract_strided_slice %12 {offsets = [0, 16], sizes = [16, 8], strides = [1, 1]} : vector<16x32xf32> to vector<16x8xf32>
    %67 = vector.shape_cast %66 : vector<16x8xf32> to vector<2x8x8xf32>
    %68 = vector.extract_strided_slice %13 {offsets = [0, 16], sizes = [16, 8], strides = [1, 1]} : vector<16x32xf32> to vector<16x8xf32>
    %69 = vector.shape_cast %68 : vector<16x8xf32> to vector<2x8x8xf32>
    %70 = vector.extract_strided_slice %14 {offsets = [0, 16], sizes = [16, 8], strides = [1, 1]} : vector<16x32xf32> to vector<16x8xf32>
    %71 = vector.shape_cast %70 : vector<16x8xf32> to vector<2x8x8xf32>
    "tpu.trace_start"() <{level = 10 : i32, message = "bqd,bkd->bqk"}> : () -> ()
    %cst_26 = arith.constant dense<0.000000e+00> : vector<2x8x8xf32>
    %72 = tpu.matmul %67, %69, %cst_26 {dimension_numbers = #tpu.dot_dimension_numbers<[2], [2], [1], [1], [0, 0, 0, 1, 1, 1], [0], [0]>} : vector<2x8x8xf32>, vector<2x8x8xf32>, vector<2x8x8xf32> -> vector<2x8x8xf32>
    "tpu.trace_stop"() : () -> ()
    %cst_27 = arith.constant 0.353553385 : f32
    %73 = vector.broadcast %cst_27 : f32 to vector<2x8x8xf32>
    %74 = arith.mulf %72, %73 : vector<2x8x8xf32>
    %75 = vector.broadcast %4 : vector<2x1x8xf32> to vector<2x8x8xf32>
    %76 = arith.addf %74, %75 : vector<2x8x8xf32>
    %cst_28 = arith.constant dense<0xFF800000> : vector<2x8xf32>
    %77 = vector.multi_reduction <maximumf>, %76, %cst_28 [2] : vector<2x8x8xf32> to vector<2x8xf32>
    %78 = vector.shape_cast %77 : vector<2x8xf32> to vector<2x8x1xf32>
    %79 = vector.broadcast %78 : vector<2x8x1xf32> to vector<2x8x8xf32>
    %80 = arith.subf %76, %79 : vector<2x8x8xf32>
    %81 = math.exp %80 : vector<2x8x8xf32>
    %cst_29 = arith.constant dense<0.000000e+00> : vector<2x8xf32>
    %82 = vector.multi_reduction <add>, %81, %cst_29 [2] : vector<2x8x8xf32> to vector<2x8xf32>
    %83 = vector.shape_cast %82 : vector<2x8xf32> to vector<2x8x1xf32>
    %84 = vector.broadcast %83 : vector<2x8x1xf32> to vector<2x8x8xf32>
    %85 = arith.divf %81, %84 : vector<2x8x8xf32>
    "tpu.trace_start"() <{level = 10 : i32, message = "bqk,bkd->bqd"}> : () -> ()
    %cst_30 = arith.constant dense<0.000000e+00> : vector<2x8x8xf32>
    %86 = tpu.matmul %85, %71, %cst_30 {dimension_numbers = #tpu.dot_dimension_numbers<[2], [1], [1], [2], [0, 0, 0, 1, 1, 2], [0], [0]>} : vector<2x8x8xf32>, vector<2x8x8xf32>, vector<2x8x8xf32> -> vector<2x8x8xf32>
    "tpu.trace_stop"() : () -> ()
    %87 = vector.shape_cast %86 : vector<2x8x8xf32> to vector<16x8xf32>
    %88 = vector.extract_strided_slice %16 {offsets = [16, 0], sizes = [8, 32], strides = [1, 1]} : vector<32x32xf32> to vector<8x32xf32>
    %cst_31 = arith.constant dense<0.000000e+00> : vector<16x32xf32>
    %89 = tpu.matmul %87, %88, %cst_31 {dimension_numbers = #tpu.dot_dimension_numbers<[1], [0], [0], [1], [0, 0, 1, 1], [], []>} : vector<16x8xf32>, vector<8x32xf32>, vector<16x32xf32> -> vector<16x32xf32>
    %90 = arith.addf %65, %89 : vector<16x32xf32>
    %91 = vector.extract_strided_slice %12 {offsets = [0, 24], sizes = [16, 8], strides = [1, 1]} : vector<16x32xf32> to vector<16x8xf32>
    %92 = vector.shape_cast %91 : vector<16x8xf32> to vector<2x8x8xf32>
    %93 = vector.extract_strided_slice %13 {offsets = [0, 24], sizes = [16, 8], strides = [1, 1]} : vector<16x32xf32> to vector<16x8xf32>
    %94 = vector.shape_cast %93 : vector<16x8xf32> to vector<2x8x8xf32>
    %95 = vector.extract_strided_slice %14 {offsets = [0, 24], sizes = [16, 8], strides = [1, 1]} : vector<16x32xf32> to vector<16x8xf32>
    %96 = vector.shape_cast %95 : vector<16x8xf32> to vector<2x8x8xf32>
    "tpu.trace_start"() <{level = 10 : i32, message = "bqd,bkd->bqk"}> : () -> ()
    %cst_32 = arith.constant dense<0.000000e+00> : vector<2x8x8xf32>
    %97 = tpu.matmul %92, %94, %cst_32 {dimension_numbers = #tpu.dot_dimension_numbers<[2], [2], [1], [1], [0, 0, 0, 1, 1, 1], [0], [0]>} : vector<2x8x8xf32>, vector<2x8x8xf32>, vector<2x8x8xf32> -> vector<2x8x8xf32>
    "tpu.trace_stop"() : () -> ()
    %cst_33 = arith.constant 0.353553385 : f32
    %98 = vector.broadcast %cst_33 : f32 to vector<2x8x8xf32>
    %99 = arith.mulf %97, %98 : vector<2x8x8xf32>
    %100 = vector.broadcast %4 : vector<2x1x8xf32> to vector<2x8x8xf32>
    %101 = arith.addf %99, %100 : vector<2x8x8xf32>
    %cst_34 = arith.constant dense<0xFF800000> : vector<2x8xf32>
    %102 = vector.multi_reduction <maximumf>, %101, %cst_34 [2] : vector<2x8x8xf32> to vector<2x8xf32>
    %103 = vector.shape_cast %102 : vector<2x8xf32> to vector<2x8x1xf32>
    %104 = vector.broadcast %103 : vector<2x8x1xf32> to vector<2x8x8xf32>
    %105 = arith.subf %101, %104 : vector<2x8x8xf32>
    %106 = math.exp %105 : vector<2x8x8xf32>
    %cst_35 = arith.constant dense<0.000000e+00> : vector<2x8xf32>
    %107 = vector.multi_reduction <add>, %106, %cst_35 [2] : vector<2x8x8xf32> to vector<2x8xf32>
    %108 = vector.shape_cast %107 : vector<2x8xf32> to vector<2x8x1xf32>
    %109 = vector.broadcast %108 : vector<2x8x1xf32> to vector<2x8x8xf32>
    %110 = arith.divf %106, %109 : vector<2x8x8xf32>
    "tpu.trace_start"() <{level = 10 : i32, message = "bqk,bkd->bqd"}> : () -> ()
    %cst_36 = arith.constant dense<0.000000e+00> : vector<2x8x8xf32>
    %111 = tpu.matmul %110, %96, %cst_36 {dimension_numbers = #tpu.dot_dimension_numbers<[2], [1], [1], [2], [0, 0, 0, 1, 1, 2], [0], [0]>} : vector<2x8x8xf32>, vector<2x8x8xf32>, vector<2x8x8xf32> -> vector<2x8x8xf32>
    "tpu.trace_stop"() : () -> ()
    %112 = vector.shape_cast %111 : vector<2x8x8xf32> to vector<16x8xf32>
    %113 = vector.extract_strided_slice %16 {offsets = [24, 0], sizes = [8, 32], strides = [1, 1]} : vector<32x32xf32> to vector<8x32xf32>
    %cst_37 = arith.constant dense<0.000000e+00> : vector<16x32xf32>
    %114 = tpu.matmul %112, %113, %cst_37 {dimension_numbers = #tpu.dot_dimension_numbers<[1], [0], [0], [1], [0, 0, 1, 1], [], []>} : vector<16x8xf32>, vector<8x32xf32>, vector<16x32xf32> -> vector<16x32xf32>
    %115 = arith.addf %90, %114 : vector<16x32xf32>
    %c0_38 = arith.constant 0 : index
    %c0_39 = arith.constant 0 : index
    %c0_40 = arith.constant 0 : index
    %116 = vector.load %arg6[%c0_38, %c0_39, %c0_40] : memref<1x1x32xf32, #tpu.memory_space<vmem>>, vector<1x1x32xf32>
    %117 = vector.shape_cast %116 : vector<1x1x32xf32> to vector<1x32xf32>
    %118 = vector.broadcast %117 : vector<1x32xf32> to vector<16x32xf32>
    %119 = arith.addf %115, %118 : vector<16x32xf32>
    %120 = arith.addf %3, %119 : vector<16x32xf32>
    %cst_41 = arith.constant dense<0.000000e+00> : vector<16xf32>
    %121 = vector.multi_reduction <add>, %120, %cst_41 [1] : vector<16x32xf32> to vector<16xf32>
    %122 = vector.shape_cast %121 : vector<16xf32> to vector<16x1xf32>
    %cst_42 = arith.constant 3.200000e+01 : f32
    %123 = vector.broadcast %cst_42 : f32 to vector<16x1xf32>
    %124 = arith.divf %122, %123 : vector<16x1xf32>
    %125 = vector.broadcast %124 : vector<16x1xf32> to vector<16x32xf32>
    %126 = arith.subf %120, %125 : vector<16x32xf32>
    %127 = vector.broadcast %124 : vector<16x1xf32> to vector<16x32xf32>
    %128 = arith.subf %120, %127 : vector<16x32xf32>
    %129 = arith.mulf %126, %128 : vector<16x32xf32>
    %cst_43 = arith.constant dense<0.000000e+00> : vector<16xf32>
    %130 = vector.multi_reduction <add>, %129, %cst_43 [1] : vector<16x32xf32> to vector<16xf32>
    %131 = vector.shape_cast %130 : vector<16xf32> to vector<16x1xf32>
    %cst_44 = arith.constant 3.200000e+01 : f32
    %132 = vector.broadcast %cst_44 : f32 to vector<16x1xf32>
    %133 = arith.divf %131, %132 : vector<16x1xf32>
    %134 = vector.broadcast %124 : vector<16x1xf32> to vector<16x32xf32>
    %135 = arith.subf %120, %134 : vector<16x32xf32>
    %cst_45 = arith.constant 9.99999974E-6 : f32
    %136 = vector.broadcast %cst_45 : f32 to vector<16x1xf32>
    %137 = arith.addf %133, %136 : vector<16x1xf32>
    %138 = math.rsqrt %137 : vector<16x1xf32>
    %139 = vector.broadcast %138 : vector<16x1xf32> to vector<16x32xf32>
    %140 = arith.mulf %135, %139 : vector<16x32xf32>
    %c0_46 = arith.constant 0 : index
    %c0_47 = arith.constant 0 : index
    %c0_48 = arith.constant 0 : index
    %141 = vector.load %arg7[%c0_46, %c0_47, %c0_48] : memref<1x1x32xf32, #tpu.memory_space<vmem>>, vector<1x1x32xf32>
    %142 = vector.shape_cast %141 : vector<1x1x32xf32> to vector<1x32xf32>
    %143 = vector.broadcast %142 : vector<1x32xf32> to vector<16x32xf32>
    %144 = arith.mulf %140, %143 : vector<16x32xf32>
    %c0_49 = arith.constant 0 : index
    %c0_50 = arith.constant 0 : index
    %c0_51 = arith.constant 0 : index
    %145 = vector.load %arg8[%c0_49, %c0_50, %c0_51] : memref<1x1x32xf32, #tpu.memory_space<vmem>>, vector<1x1x32xf32>
    %146 = vector.shape_cast %145 : vector<1x1x32xf32> to vector<1x32xf32>
    %147 = vector.broadcast %146 : vector<1x32xf32> to vector<16x32xf32>
    %148 = arith.addf %144, %147 : vector<16x32xf32>
    %c0_52 = arith.constant 0 : index
    %c0_53 = arith.constant 0 : index
    %c0_54 = arith.constant 0 : index
    %149 = vector.load %arg9[%c0_52, %c0_53, %c0_54] : memref<1x32x64xf32, #tpu.memory_space<vmem>>, vector<1x32x64xf32>
    %150 = vector.shape_cast %149 : vector<1x32x64xf32> to vector<32x64xf32>
    %cst_55 = arith.constant dense<0.000000e+00> : vector<16x64xf32>
    %151 = tpu.matmul %148, %150, %cst_55 {dimension_numbers = #tpu.dot_dimension_numbers<[1], [0], [0], [1], [0, 0, 1, 1], [], []>} : vector<16x32xf32>, vector<32x64xf32>, vector<16x64xf32> -> vector<16x64xf32>
    %c0_56 = arith.constant 0 : index
    %c0_57 = arith.constant 0 : index
    %c0_58 = arith.constant 0 : index
    %152 = vector.load %arg10[%c0_56, %c0_57, %c0_58] : memref<1x1x64xf32, #tpu.memory_space<vmem>>, vector<1x1x64xf32>
    %153 = vector.shape_cast %152 : vector<1x1x64xf32> to vector<1x64xf32>
    %154 = vector.broadcast %153 : vector<1x64xf32> to vector<16x64xf32>
    %155 = arith.addf %151, %154 : vector<16x64xf32>
    %cst_59 = arith.constant 0.000000e+00 : f32
    %156 = vector.broadcast %cst_59 : f32 to vector<16x64xf32>
    %157 = arith.maximumf %155, %156 : vector<16x64xf32>
    %c0_60 = arith.constant 0 : index
    %c0_61 = arith.constant 0 : index
    %c0_62 = arith.constant 0 : index
    %158 = vector.load %arg11[%c0_60, %c0_61, %c0_62] : memref<1x64x32xf32, #tpu.memory_space<vmem>>, vector<1x64x32xf32>
    %159 = vector.shape_cast %158 : vector<1x64x32xf32> to vector<64x32xf32>
    %cst_63 = arith.constant dense<0.000000e+00> : vector<16x32xf32>
    %160 = tpu.matmul %157, %159, %cst_63 {dimension_numbers = #tpu.dot_dimension_numbers<[1], [0], [0], [1], [0, 0, 1, 1], [], []>} : vector<16x64xf32>, vector<64x32xf32>, vector<16x32xf32> -> vector<16x32xf32>
    %c0_64 = arith.constant 0 : index
    %c0_65 = arith.constant 0 : index
    %c0_66 = arith.constant 0 : index
    %161 = vector.load %arg12[%c0_64, %c0_65, %c0_66] : memref<1x1x32xf32, #tpu.memory_space<vmem>>, vector<1x1x32xf32>
    %162 = vector.shape_cast %161 : vector<1x1x32xf32> to vector<1x32xf32>
    %163 = vector.broadcast %162 : vector<1x32xf32> to vector<16x32xf32>
    %164 = arith.addf %160, %163 : vector<16x32xf32>
    %165 = arith.addf %148, %164 : vector<16x32xf32>
    %cst_67 = arith.constant dense<0.000000e+00> : vector<16xf32>
    %166 = vector.multi_reduction <add>, %165, %cst_67 [1] : vector<16x32xf32> to vector<16xf32>
    %167 = vector.shape_cast %166 : vector<16xf32> to vector<16x1xf32>
    %cst_68 = arith.constant 3.200000e+01 : f32
    %168 = vector.broadcast %cst_68 : f32 to vector<16x1xf32>
    %169 = arith.divf %167, %168 : vector<16x1xf32>
    %170 = vector.broadcast %169 : vector<16x1xf32> to vector<16x32xf32>
    %171 = arith.subf %165, %170 : vector<16x32xf32>
    %172 = vector.broadcast %169 : vector<16x1xf32> to vector<16x32xf32>
    %173 = arith.subf %165, %172 : vector<16x32xf32>
    %174 = arith.mulf %171, %173 : vector<16x32xf32>
    %cst_69 = arith.constant dense<0.000000e+00> : vector<16xf32>
    %175 = vector.multi_reduction <add>, %174, %cst_69 [1] : vector<16x32xf32> to vector<16xf32>
    %176 = vector.shape_cast %175 : vector<16xf32> to vector<16x1xf32>
    %cst_70 = arith.constant 3.200000e+01 : f32
    %177 = vector.broadcast %cst_70 : f32 to vector<16x1xf32>
    %178 = arith.divf %176, %177 : vector<16x1xf32>
    %179 = vector.broadcast %169 : vector<16x1xf32> to vector<16x32xf32>
    %180 = arith.subf %165, %179 : vector<16x32xf32>
    %cst_71 = arith.constant 9.99999974E-6 : f32
    %181 = vector.broadcast %cst_71 : f32 to vector<16x1xf32>
    %182 = arith.addf %178, %181 : vector<16x1xf32>
    %183 = math.rsqrt %182 : vector<16x1xf32>
    %184 = vector.broadcast %183 : vector<16x1xf32> to vector<16x32xf32>
    %185 = arith.mulf %180, %184 : vector<16x32xf32>
    %c0_72 = arith.constant 0 : index
    %c0_73 = arith.constant 0 : index
    %c0_74 = arith.constant 0 : index
    %186 = vector.load %arg13[%c0_72, %c0_73, %c0_74] : memref<1x1x32xf32, #tpu.memory_space<vmem>>, vector<1x1x32xf32>
    %187 = vector.shape_cast %186 : vector<1x1x32xf32> to vector<1x32xf32>
    %188 = vector.broadcast %187 : vector<1x32xf32> to vector<16x32xf32>
    %189 = arith.mulf %185, %188 : vector<16x32xf32>
    %c0_75 = arith.constant 0 : index
    %c0_76 = arith.constant 0 : index
    %c0_77 = arith.constant 0 : index
    %190 = vector.load %arg14[%c0_75, %c0_76, %c0_77] : memref<1x1x32xf32, #tpu.memory_space<vmem>>, vector<1x1x32xf32>
    %191 = vector.shape_cast %190 : vector<1x1x32xf32> to vector<1x32xf32>
    %192 = vector.broadcast %191 : vector<1x32xf32> to vector<16x32xf32>
    %193 = arith.addf %189, %192 : vector<16x32xf32>
    %c0_78 = arith.constant 0 : index
    %c0_79 = arith.constant 0 : index
    %194 = vector.load %arg16[%c0_78, %c0_79] : memref<16x32xf32, #tpu.memory_space<vmem>>, vector<16x32xf32>
    tpu.vector_store %arg16[%c0_78, %c0_79], %193 {strides = array<i32>} : memref<16x32xf32, #tpu.memory_space<vmem>>, vector<16x32xf32>,
    %c0_80 = arith.constant 0 : index
    %c0_81 = arith.constant 0 : index
    %c0_82 = arith.constant 0 : index
    %195 = vector.load %arg15[%c0_80, %c0_81, %c0_82] : memref<1x16x32xf32, #tpu.memory_space<vmem>>, vector<1x16x32xf32>
    %196 = vector.shape_cast %195 : vector<1x16x32xf32> to vector<16x32xf32>
    %197 = vector.shape_cast %193 : vector<16x32xf32> to vector<1x16x32xf32>
    tpu.vector_store %arg15[%c0_80, %c0_81, %c0_82], %197 {strides = array<i32>} : memref<1x16x32xf32, #tpu.memory_space<vmem>>, vector<1x16x32xf32>,
    return
  }
  func.func @transform_0(%arg0: i32) -> (i32, i32) {
    %c0_i32 = arith.constant 0 : i32
    %c0_i32_0 = arith.constant 0 : i32
    %c0_i32_1 = arith.constant 0 : i32
    return %c0_i32, %c0_i32_0 : i32, i32
  }
  func.func @transform_1(%arg0: i32) -> (i32, i32, i32) {
    %c0_i32 = arith.constant 0 : i32
    %c0_i32_0 = arith.constant 0 : i32
    %c0_i32_1 = arith.constant 0 : i32
    %c0_i32_2 = arith.constant 0 : i32
    return %c0_i32, %c0_i32_0, %c0_i32_1 : i32, i32, i32
  }
  func.func @transform_2(%arg0: i32) -> (i32, i32, i32) {
    %c0_i32 = arith.constant 0 : i32
    %c0_i32_0 = arith.constant 0 : i32
    %c0_i32_1 = arith.constant 0 : i32
    return %arg0, %c0_i32, %c0_i32_0 : i32, i32, i32
  }
  func.func @transform_3(%arg0: i32) -> (i32, i32, i32) {
    %c0_i32 = arith.constant 0 : i32
    %c0_i32_0 = arith.constant 0 : i32
    %c0_i32_1 = arith.constant 0 : i32
    return %arg0, %c0_i32, %c0_i32_0 : i32, i32, i32
  }
  func.func @transform_4(%arg0: i32) -> (i32, i32, i32) {
    %c0_i32 = arith.constant 0 : i32
    %c0_i32_0 = arith.constant 0 : i32
    %c0_i32_1 = arith.constant 0 : i32
    return %arg0, %c0_i32, %c0_i32_0 : i32, i32, i32
  }
  func.func @transform_5(%arg0: i32) -> (i32, i32, i32) {
    %c0_i32 = arith.constant 0 : i32
    %c0_i32_0 = arith.constant 0 : i32
    %c0_i32_1 = arith.constant 0 : i32
    return %arg0, %c0_i32, %c0_i32_0 : i32, i32, i32
  }
  func.func @transform_6(%arg0: i32) -> (i32, i32, i32) {
    %c0_i32 = arith.constant 0 : i32
    %c0_i32_0 = arith.constant 0 : i32
    %c0_i32_1 = arith.constant 0 : i32
    return %arg0, %c0_i32, %c0_i32_0 : i32, i32, i32
  }
  func.func @transform_7(%arg0: i32) -> (i32, i32, i32) {
    %c0_i32 = arith.constant 0 : i32
    %c0_i32_0 = arith.constant 0 : i32
    %c0_i32_1 = arith.constant 0 : i32
    return %arg0, %c0_i32, %c0_i32_0 : i32, i32, i32
  }
  func.func @transform_8(%arg0: i32) -> (i32, i32, i32) {
    %c0_i32 = arith.constant 0 : i32
    %c0_i32_0 = arith.constant 0 : i32
    %c0_i32_1 = arith.constant 0 : i32
    return %arg0, %c0_i32, %c0_i32_0 : i32, i32, i32
  }
  func.func @transform_9(%arg0: i32) -> (i32, i32, i32) {
    %c0_i32 = arith.constant 0 : i32
    %c0_i32_0 = arith.constant 0 : i32
    %c0_i32_1 = arith.constant 0 : i32
    return %arg0, %c0_i32, %c0_i32_0 : i32, i32, i32
  }
  func.func @transform_10(%arg0: i32) -> (i32, i32, i32) {
    %c0_i32 = arith.constant 0 : i32
    %c0_i32_0 = arith.constant 0 : i32
    %c0_i32_1 = arith.constant 0 : i32
    return %arg0, %c0_i32, %c0_i32_0 : i32, i32, i32
  }
  func.func @transform_11(%arg0: i32) -> (i32, i32, i32) {
    %c0_i32 = arith.constant 0 : i32
    %c0_i32_0 = arith.constant 0 : i32
    %c0_i32_1 = arith.constant 0 : i32
    return %arg0, %c0_i32, %c0_i32_0 : i32, i32, i32
  }
  func.func @transform_12(%arg0: i32) -> (i32, i32, i32) {
    %c0_i32 = arith.constant 0 : i32
    %c0_i32_0 = arith.constant 0 : i32
    %c0_i32_1 = arith.constant 0 : i32
    return %arg0, %c0_i32, %c0_i32_0 : i32, i32, i32
  }
  func.func @transform_13(%arg0: i32) -> (i32, i32, i32) {
    %c0_i32 = arith.constant 0 : i32
    %c0_i32_0 = arith.constant 0 : i32
    %c0_i32_1 = arith.constant 0 : i32
    return %arg0, %c0_i32, %c0_i32_0 : i32, i32, i32
  }
  func.func @transform_14(%arg0: i32) -> (i32, i32, i32) {
    %c0_i32 = arith.constant 0 : i32
    %c0_i32_0 = arith.constant 0 : i32
    %c0_i32_1 = arith.constant 0 : i32
    return %arg0, %c0_i32, %c0_i32_0 : i32, i32, i32
  }
}

</mosaic_0001>

<bundles_post_ra>
// kernel: tpu_custom_call.1
= control target key start
LH: loop header
LB: loop body
LE: loop exit
PB: predicated region body
PF: predicated region fallthrough
CT: control target
= control target key end

     0   :  { %s2969_s0 = inlined_call_operand.hbm [shape: f32[16,32], index: 0, kind: input, shape index: {}]   ;;  %s2970_s1 = inlined_call_operand.hbm [shape: f32[2,1,8], index: 1, kind: input, shape index: {}]   ;;  %s2971_s2 = inlined_call_operand.vmem [shape: f32[2,32,96], index: 2, kind: input, shape index: {}]   ;;  %s2972_s3 = inlined_call_operand.vmem [shape: f32[2,1,96], index: 3, kind: input, shape index: {}]   ;;  %s2973_s4 = inlined_call_operand.vmem [shape: f32[2,32,32], index: 4, kind: input, shape index: {}]   ;;  %s2974_s5 = inlined_call_operand.hbm [shape: f32[2,1,32], index: 5, kind: input, shape index: {}]   ;;  %s2975_s6 = inlined_call_operand.vmem [shape: f32[2,1,32], index: 6, kind: input, shape index: {}]   ;;  %s2976_s7 = inlined_call_operand.hbm [shape: f32[2,1,32], index: 7, kind: input, shape index: {}]   ;;  %s2977_s8 = inlined_call_operand.vmem [shape: f32[2,32,64], index: 8, kind: input, shape index: {}]   ;;  %s2978_s9 = inlined_call_operand.vmem [shape: f32[2,1,64], index: 9, kind: input, shape index: {}]   ;;  %s2979_s10 = inlined_call_operand.vmem [shape: f32[2,64,32], index: 10, kind: input, shape index: {}]   ;;  %s2980_s11 = inlined_call_operand.vmem [shape: f32[2,1,32], index: 11, kind: input, shape index: {}]   ;;  %s2981_s12 = inlined_call_operand.vmem [shape: f32[2,1,32], index: 12, kind: input, shape index: {}]   ;;  %s2982_s13 = inlined_call_operand.hbm [shape: f32[2,1,32], index: 13, kind: input, shape index: {}]   ;;  %s2983_s14 = inlined_call_operand.hbm [shape: f32[2,16,32], index: 14, kind: output, shape index: {}]  }
   0x1   :  { %2993 = sst [smem:[#allocation22_spill]] %s2969_s0 }
   0x2   :  { %2994 = sst [smem:[#allocation23_spill]] %s2970_s1 }
   0x3   :  { %2995 = sst [smem:[#allocation24_spill]] %s2971_s2 }
   0x4   :  { %2996 = sst [smem:[#allocation25_spill]] %s2973_s4 }
   0x5   :  { %2997 = sst [smem:[#allocation26_spill]] %s2974_s5 }
   0x6   :  { %2998 = sst [smem:[#allocation27_spill]] %s2976_s7 }
   0x7   :  { %2999 = sst [smem:[#allocation28_spill]] %s2977_s8 }
   0x8   :  { %3000 = sst [smem:[#allocation29_spill]] %s2979_s10 }
   0x9   :  { %3001 = sst [smem:[#allocation30_spill]] %s2980_s11 }
   0xa   :  { %3002 = sst [smem:[#allocation31_spill]] %s2981_s12 }
   0xb   :  { %3003 = sst [smem:[#allocation32_spill]] %s2982_s13 }
   0xc   :  { %3004 = sst [smem:[#allocation33_spill]] %s2983_s14 }
   0xd   :  { %19 = vsyncpa [#allocation4], 0 }
   0xe   :  { %20 = vsyncpa [#allocation7], 0 }
   0xf   :  { %21 = vsyncpa [#allocation5], 0 }
  0x10   :  { %23 = vsyncpa [#allocation5 + $0x1], 0  ;;  %s2523_s29 = smov 0   ;;  %s2525_s30 = smov 0  }
  0x11   :  { %s2527_s15 = smov 0   ;;  %s2529_s16 = smov 0  }
  0x12 LB: > { %3005 = sst [smem:[#allocation16_spill]] %s2414_s29  ;;  %s2544_s17 = sadd.s32 4294967295, %s2426_s16   ;;  %s2426_s16 = sphi %s2529_s16, %s3043_s16   ;;  %s2422_s15 = sphi %s2527_s15, %s3045_s15   ;;  %s2418_s30 = sphi %s2525_s30, %s3047_s30   ;;  %s2414_s29 = sphi %s2523_s29, %s3046_s29  }
  0x13   : > { %3006 = sst [smem:[#allocation17_spill]] %s2422_s15  ;;  %s1989_s18 = sadd.s32 4294967294, %s2426_s16  }
  0x14   : > { %p169_p0 = scmp.ne.s32.totalorder %s2418_s30, %s2414_s29  ;;  %p2992_p1 = scmp.eq.s32.totalorder %s2544_s17, 0 }
  0x15   : > { %p401_p2 = scmp.eq.s32.totalorder %s2544_s17, 1  ;;  %p407_p3 = scmp.eq.s32.totalorder %s1989_s18, 1 }
  0x16   : > { %p2553_p4 = por %p2992_p1, %p169_p0  ;;  %p1990_p5 = scmp.ge.s32.totalorder %s2426_s16, 1 }
  0x17   : > { %p2558_p6 = por %p407_p3, %p169_p0  ;;  %p414_p7 = scmp.lt.s32.totalorder %s2426_s16, 3 }
  0x18   : > { %s3010_s0 = sld [smem:[#allocation22_spill]]  ;;  %s2428_s25 = smov [#allocation3]  }
  0x19   : > { %s3008_s20 = scalar_select %p2558_p6, 1, 0 }
  0x1a   : > { %p2567_p9 = pnand %p1990_p5, %p414_p7  ;;  %s427_s26 = sshll.u32 %s2428_s25, 4  ;;  %s428_s26 = int_to_ptr.vmem [resolvable:$true] %s427_s26 }
  0x1b   : > { %3009 = sst [smem:[#allocation18_spill]] %s3008_s20  ;;  %s2581_s28 = sadd.s32 1, %s2426_s16  }
  0x1c   : > { %p2071_p10 = pneg %p2567_p9  ;;  %3013 = sst [smem:[#allocation19_spill]] %s2581_s28 }
  0x1d   : > { %s2429_s18 = smov 128   ;;  %s2430_s21 = smov 8  }
  0x1e   : > { %s425_s23 = sshll.u32 %s3010_s0, 4  ;;  %p2575_p11 = pnand %p2071_p10, %p2992_p1  ;;  %s426_s23 = int_to_ptr.hbm [resolvable:$true] %s425_s23 }
  0x1f   : > { %s153_s22 = ssub.s32 %s2426_s16, %s2581_s28  ;;  %s156_s25 = sadd.s32 1, %s2422_s15 }
  0x20   : > { %2074 = dma.hbm_to_vmem [thread:$0]  (!%p2575_p11), %s426_s23, 256, %s428_s26, [#allocation4], %s2429_s18, %s2429_s18, %s2430_s21  }
  0x21   : > { %p154_p13 = scmp.eq.s32.totalorder %s153_s22, 0  ;;  %p163_p0 = scmp.ne.s32.totalorder %s2422_s15, %s2418_s30 }
  0x22   : > { %p164_p3 = scmp.eq.s32.totalorder %s2426_s16, 0  ;;  %p2094_p5 = scmp.lt.s32.totalorder %s2426_s16, 2 }
  0x23   : > { %s2593_s0 = scalar_select %p154_p13, %s2422_s15, %s156_s25  }
  0x24   : > { %p165_p7 = por %p164_p3, %p163_p0  ;;  %p2597_p10 = por %p401_p2, %p163_p0 }
  0x25   : > { %3014 = sst [smem:[#allocation20_spill]] %s2593_s0  ;;  %s477_s29 = sand.u32 1, %s2426_s16  }
  0x26   : > { %s3015_s20 = scalar_select %p2597_p10, 1, 0 }
  0x27   : > { %s2603_s14 = sand.u32 1, %s2422_s15   ;;  %s3017_s5 = sld [smem:[#allocation26_spill]] }
  0x28   : > { %3016 = sst [smem:[#allocation21_spill]] %s3015_s20  ;;  %s480_s18 = scalar_lea.vmem [#allocation8], %s2603_s14 }
  0x29   : > { %s487_s21 = sshll.u32 %s480_s18, 4  ;;  %p2610_p13 = pnand %p2094_p5, %p165_p7  ;;  %s488_s21 = int_to_ptr.vmem [resolvable:$true] %s487_s21 }
  0x2a   : > { %s3019_s7 = sld [smem:[#allocation27_spill]]  ;;  %s2620_s12 = scalar_lea.sflag [#allocation4], %s477_s29 }
  0x2b   : > { %p2236_p0 = pneg %p2610_p13 }
  0x2d   : > { %s483_s26 = scalar_lea.hbm %s3017_s5, %s2426_s16  ;;  %s2239_s0 = scalar_lea.hbm %s3017_s5, 2 }
  0x2e   : > { %s485_s22 = sshll.u32 %s483_s26, 4  ;;  %s486_s22 = int_to_ptr.hbm [resolvable:$true] %s485_s22 }
  0x2f   : > { %s2232_s23 = sshra.s32 %s486_s22, 4  ;;  %s2233_s23 = int_to_ptr.hbm [resolvable:$true] %s2232_s23 }
  0x30   : > { %s506_s15 = scalar_lea.hbm %s3019_s7, %s2426_s16  ;;  %s2234_s18 = scalar_lea.hbm %s2233_s23, 1 }
  0x31   : > { %s2618_s20 = sshll.u32 %s506_s15, 4  ;;  %p2235_p2 = scmp.ne.s32.totalorder %s2233_s23, %s2234_s18  ;;  %s509_s20 = int_to_ptr.hbm [resolvable:$true] %s2618_s20 }
  0x32   : > { %p2240_p7 = scmp.lt.s32.totalorder %s2233_s23, %s3017_s5  ;;  %p2241_p12 = scmp.lt.s32.totalorder %s2239_s0, %s2234_s18 }
  0x33   : > { %p2237_p3 = pnand %p2236_p0, %p2235_p2 }
  0x34   : > { %p2242_p8 = por %p2241_p12, %p2240_p7 }
  0x35   : > { %p2238_p5 = pneg %p2237_p3 }
  0x37   : > { %p2243_p1 = pnand %p2242_p8, %p2238_p5 }
  0x39   : > { %2246 = shalt.err (!%p2243_p1)
}
  0x3a   : > { %2081 = dma.hbm_to_vmem [thread:$0]  (!%p2610_p13), %s486_s22, 16, %s488_s21, %s2620_s12  }
  0x3b   : > { %s503_s29 = scalar_lea.vmem [#allocation9], %s2603_s14  ;;  %s3020_s1 = sld [smem:[#allocation23_spill]] }
  0x3c   : > { %s510_s15 = sshll.u32 %s503_s29, 4  ;;  %s2262_s23 = sshra.s32 %s509_s20, 4  ;;  %s511_s15 = int_to_ptr.vmem [resolvable:$true] %s510_s15  ;;  %s2263_s23 = int_to_ptr.hbm [resolvable:$true] %s2262_s23 }
  0x3d   : > { %s2264_s18 = scalar_lea.hbm %s2263_s23, 1  ;;  %s2269_s21 = scalar_lea.hbm %s3019_s7, 2 }
  0x3e   : > { %p2265_p8 = scmp.ne.s32.totalorder %s2263_s23, %s2264_s18  ;;  %p2270_p2 = scmp.lt.s32.totalorder %s2263_s23, %s3019_s7 }
  0x3f   : > { %p2271_p3 = scmp.lt.s32.totalorder %s2269_s21, %s2264_s18 }
  0x40   : > { %p2267_p1 = pnand %p2265_p8, %p2236_p0 }
  0x41   : > { %s439_s10 = sshll.u32 %s3020_s1, 4  ;;  %p2272_p5 = por %p2271_p3, %p2270_p2  ;;  %s440_s10 = int_to_ptr.hbm [resolvable:$true] %s439_s10 }
  0x42   : > { %p2268_p12 = pneg %p2267_p1 }
  0x44   : > { %p2273_p7 = pnand %p2272_p5, %p2268_p12 }
  0x46   : > { %2276 = shalt.err (!%p2273_p7)
}
  0x47   : > { %2084 = dma.hbm_to_vmem [thread:$0]  (!%p2610_p13), %s509_s20, 16, %s511_s15, %s2620_s12  }
  0x48   : > { %s2431_s29 = smov [#allocation6]   ;;  %s2432_s26 = smov 16  }
  0x49   : > { %s441_s11 = sshll.u32 %s2431_s29, 4  ;;  %s2433_s0 = smov 1   ;;  %s442_s11 = int_to_ptr.vmem [resolvable:$true] %s441_s11 }
  0x4a   : > { %2077 = dma.hbm_to_vmem [thread:$0]  (!%p2575_p11), %s440_s10, 32, %s442_s11, [#allocation7], %s2432_s26, %s2432_s26, %s2433_s0  }
  0x4b   : > { %s3021_s13 = sld [smem:[#allocation32_spill]]  ;;  %s554_s21 = scalar_lea.vmem [#allocation10], %s2603_s14 }
  0x4c   : > { %s561_s22 = sshll.u32 %s554_s21, 4  ;;  %s562_s22 = int_to_ptr.vmem [resolvable:$true] %s561_s22 }
  0x51   : > { %s557_s18 = scalar_lea.hbm %s3021_s13, %s2426_s16  ;;  %s2329_s10 = scalar_lea.hbm %s3021_s13, 2 }
  0x52   : > { %s559_s28 = sshll.u32 %s557_s18, 4  ;;  %s560_s28 = int_to_ptr.hbm [resolvable:$true] %s559_s28 }
  0x53   : > { %s2322_s1 = sshra.s32 %s560_s28, 4  ;;  %s2323_s1 = int_to_ptr.hbm [resolvable:$true] %s2322_s1 }
  0x54   : > { %s2324_s20 = scalar_lea.hbm %s2323_s1, 1  ;;  %p2330_p11 = scmp.lt.s32.totalorder %s2323_s1, %s3021_s13 }
  0x55   : > { %p2325_p8 = scmp.ne.s32.totalorder %s2323_s1, %s2324_s20  ;;  %p2331_p2 = scmp.lt.s32.totalorder %s2329_s10, %s2324_s20 }
  0x57   : > { %p2327_p1 = pnand %p2325_p8, %p2236_p0  ;;  %p2332_p3 = por %p2331_p2, %p2330_p11 }
  0x59   : > { %p2328_p12 = pneg %p2327_p1 }
  0x5b   : > { %p2333_p5 = pnand %p2332_p3, %p2328_p12 }
  0x5d   : > { %2336 = shalt.err (!%p2333_p5)
}
  0x5e   : > { %2087 = dma.hbm_to_vmem [thread:$0]  (!%p2610_p13), %s560_s28, 16, %s562_s22, %s2620_s12  }
  0x5f   : > { %570 = sbr.rel (%p2567_p9) target bundleno = 2748 (0xabc), region = 76  ;;  %p3022_p0 = scmp.eq.s32.totalorder (!%p2567_p9), %s2544_s17, 0 }
  0x64   : > { %2397 = dma.done.wait (%p3022_p0), [#allocation4], 256   ;;  %p3023_p7 = pmov %p3022_p0 }
  0x65   : > { %p3024_p8 = pmov %p3022_p0 }
  0x66   : > { %2399 = vsyncadd (%p3023_p7), [#allocation4], 4294967040 }
  0x67   : > { %2401 = dma.done.wait (%p3024_p8), [#allocation7], 32   ;;  %p3025_p1 = pmov %p3022_p0 }
  0x68   : > { %s582_s1 = sand.u32 1, %s2544_s17   ;;  %s2684_s14 = sand.u32 1, %s2418_s30  }
  0x69   : > { %2403 = vsyncadd (%p3025_p1), [#allocation7], 4294967264  ;;  %s583_s24 = scalar_lea.sflag [#allocation4], %s582_s1 }
  0x6a   : > { %2405 = dma.done.wait (%p2553_p4), %s583_s24, 48  }
  0x6b   : > { %2407 = vsyncadd (%p2553_p4), %s583_s24, 4294967248  ;;  %s1997_s12 = sshll.u32 %s2684_s14, 4  ;;  %p691_p9 = scmp.lt.s32.totalorder %s2544_s17, 1 }
  0x6c   : > { %s3026_s2 = sld [smem:[#allocation24_spill]]  ;;  %s603_s1 = scalar_lea.vmem [#allocation10], %s2684_s14 }
  0x6d   : > { %s2694_s26 = scalar_select %p691_p9, %s2544_s17, 1 }
  0x6e   : > { %s3027_s4 = sld [smem:[#allocation25_spill]]  ;;  %p3032_p4 = scmp.ne.s32.totalorder %s2544_s17, 0 }
  0x6f   : > { %s2050_s0 = sshll.u32 %s2694_s26, 5  ;;  %s3028_s8 = sld [smem:[#allocation28_spill]] }
  0x70   : > { %s714_s25 = scalar_lea.vmem %s2978_s9, %s2694_s26  ;;  %s2053_s18 = sshll.u32 %s2694_s26, 6 }
  0x71   : > { %s3030_s7 = sld [smem:[#allocation30_spill]] }
  0x72   : > { %s695_s21 = scalar_lea.vmem %s3026_s2, %s2050_s0  ;;  %s3029_s2 = sld [smem:[#allocation29_spill]] }
  0x73   : > { %s3031_s13 = sld [smem:[#allocation31_spill]] }
  0x74   : > { %s2707_s15 = scalar_lea.vmem %s3027_s4, %s2050_s0 }
  0x75   : > { %s2716_s24 = scalar_lea.vmem %s3028_s8, %s2050_s0  ;;  %s594_s0 = scalar_lea.vmem [#allocation9], %s2684_s14 }
  0x76   : > { %s2738_s8 = scalar_lea.vmem [#allocation11], %s1997_s12  ;;  %729 = sbr.rel (%p3032_p4) target bundleno = 126 (0x7e), region = 100 }
  0x77   : > { %s722_s27 = scalar_lea.vmem %s3030_s7, %s2694_s26 }
  0x78   : > { %s2726_s22 = scalar_lea.vmem %s3029_s2, %s2053_s18 }
  0x79   : > { %s725_s11 = scalar_lea.vmem %s3031_s13, %s2694_s26 }
  0x7b   : > { %v730_v0 = vld [vmem:[#allocation3] sm:$0xff]  ;;  %vm732_vm0 = vcmask 261120   ;;  %v731_v1 = vld [vmem:[#allocation3 + $0x8] sm:$0xff] }
  0x7c   : > { %733 = vst.msk [vmem:[#allocation2] sm:$0xff] %vm732_vm0, %v730_v0 }
  0x7d   : > { %734 = vst.msk [vmem:[#allocation2 + $0x8] sm:$0xff] %vm732_vm0, %v731_v1 }
  0x7e PF: > { %v742_v2 = vld [vmem:[%s695_s21 + $0x18] sm:$0xff]  ;;  %v741_v3 = vld [vmem:[%s695_s21 + $0x10] sm:$0xff]  ;;  %v740_v4 = vld [vmem:[%s695_s21 + $0x8] sm:$0xff]  ;;  %vm747_vm1 = vcmask 261120   ;;  %s3033_s7 = scalar_lea.vmem %s2972_s3, %s2694_s26  ;;  %s2434_s13 = smov 88   ;;  %vm784_vm2 = vcmask 64512  }
  0x7f   : > { %766 = vmatpush.msra.mxu0 %v742_v2  ;;  %v739_v5 = vld [vmem:[%s695_s21] sm:$0xff]  ;;  %s2435_s12 = smov 96   ;;  %s2436_s23 = smov 120  }
  0x80   : > { %v2150_v8 = vld [vmem:[%s3033_s7] ss:$0 sm:$0xff]  ;;  %s2437_s21 = smov 64   ;;  %s2438_s29 = smov 112   ;;  %v2785_v28 = vld [vmem:[#allocation6 + $0x1] ss:$0 sm:$0xff] }
  0x81   : > { %767 = vmatpush.msra.mxu0 %v741_v3  ;;  %v2773_v17 = vld [vmem:[#allocation6] ss:$0 sm:$0xff]  ;;  %s2439_s5 = smov 56   ;;  %s2440_s19 = smov 80  }
  0x82   : > { %s2441_s18 = smov 72   ;;  %s2442_s28 = smov 104  }
  0x83   : > { %768 = vmatpush.msra.mxu0 %v740_v4  ;;  %v2742_v6 = vld [vmem:[#allocation2] sm:$0xff]  ;;  %s2443_s20 = smov 48   ;;  %s2444_s10 = smov 40  }
  0x84   : > { %v2746_v7 = vld [vmem:[#allocation2 + $0x8] sm:$0xff]  ;;  %s3034_s2 = scalar_lea.vmem [#allocation8], %s2684_s14  ;;  %s3035_s4 = scalar_lea.vmem %s2975_s6, %s2694_s26 }
  0x85   : > { %769 = vmatpush.msra.mxu0 %v739_v5  ;;  %s2054_s26 = sshll.u32 %s2544_s17, 4  ;;  %s1761_s17 = scalar_lea.sflag [#allocation5], %s2684_s14 }
  0x86   : > { %2007 = vmatmul.msk.f32.vlgmr.msra.gmra.mxu0 %vm747_vm1, %v2742_v6 }
  0x8e   : > { %2008 = vmatmul.msk.f32.gmra.mxu0 %vm747_vm1, %v2746_v7 }
 0x103   : > { %v771_v9 = vpop.f32.mrf.mxu0 }
 0x104   : > { %v2755_v10 = vadd.f32 %v2150_v8, %v771_v9 }
 0x106   : > { %948 = vrot.lane.b32.xlu1 %v2755_v10, %s2434_s13  ;;  %782 = vrot.lane.b32.xlu0 %v2755_v10, %s2435_s12 }
 0x10b   : > { %v774_v11 = vpop.f32.mrf.mxu0 }
 0x10c   : > { %v2760_v12 = vadd.f32 %v2150_v8, %v774_v11 }
 0x10e   : > { %946 = vrot.lane.b32.xlu1 %v2755_v10, %s2436_s23  ;;  %810 = vrot.lane.b32.xlu0 %v2760_v12, %s2435_s12 }
 0x178   : > { %v949_v13 = vpop.permute.xlu1 %948  ;;  %v783_v14 = vpop.permute.xlu0 %782 }
 0x179   : > { %2009 = vmatpush.xpose.msk.msrb.mxu0 %vm784_vm2, %v783_v14  ;;  %2015 = vmatpush.xpose.msk.msra.mxu1 %vm784_vm2, %v949_v13 }
 0x17c   : > { %2010 = vmatmul.msk.f32.vlgmr.msrb.gmra.mxu0 %vm784_vm2, %v2755_v10 }
 0x180   : > { %v947_v15 = vpop.permute.xlu1 %946  ;;  %v811_v16 = vpop.permute.xlu0 %810 }
 0x181   : > { %2011 = vmatpush.xpose.msk.msra.mxu2 %vm784_vm2, %v811_v16  ;;  %2016 = vmatmul.msk.f32.vlgmr.msra.gmra.mxu1 %vm784_vm2, %v947_v15 }
 0x184   : > { %2012 = vmatmul.msk.f32.vlgmr.msra.gmra.mxu2 %vm784_vm2, %v2760_v12 }
 0x1f9   : > { %v806_v18 = vpop.f32.mrf.mxu0 }
 0x1fa   : > { %v836_v19 = vmul.f32 0.35355338, %v806_v18 }
 0x1fc   : > { %v844_v20 = vadd.f32 %v2773_v17, %v836_v19 }
 0x1fe   : > { %v971_v21 = vpop.f32.mrf.mxu1  ;;  %v846_v22 = vsel %vm784_vm2, %v844_v20, -inf }
 0x1ff   : > { %v1002_v23 = vmul.f32 0.35355338, %v971_v21  ;;  %847 = vmax.xlane.f32.xlu2 %v846_v22 }
 0x201   : > { %v1004_v24 = vadd.f32 %v2773_v17, %v1002_v23 }
 0x203   : > { %v1006_v25 = vsel %vm784_vm2, %v1004_v24, -inf }
 0x204   : > { %1007 = vmax.xlane.f32.xlu0 %v1006_v25 }
 0x207   : > { %v833_v26 = vpop.f32.mrf.mxu2 }
 0x208   : > { %v837_v27 = vmul.f32 0.35355338, %v833_v26 }
 0x20a   : > { %v845_v29 = vadd.f32 %v2785_v28, %v837_v27 }
 0x20c   : > { %v849_v30 = vsel %vm784_vm2, %v845_v29, -inf }
 0x217   : > { %894 = vrot.lane.b32.xlu2 %v2755_v10, %s2437_s21 }
 0x218   : > { %976 = vrot.lane.b32.xlu0 %v2760_v12, %s2434_s13 }
 0x21f   : > { %920 = vrot.lane.b32.xlu2 %v2760_v12, %s2437_s21  ;;  %s3038_s21 = sld [smem:[#allocation33_spill]] }
 0x220   : > { %1164 = vrot.lane.b32.xlu0 %v2755_v10, %s2438_s29 }
 0x248   : > { %850 = vmax.xlane.f32.xlu2 %v849_v30 }
 0x260   : > { %1054 = vrot.lane.b32.xlu2 %v2755_v10, %s2439_s5 }
 0x272   : > { %v848_v31 = vpop.xlane.xlu2 %847 }
 0x273   : > { %v852_v32 = vsub.f32 %v844_v20, %v848_v31  ;;  %v777_v31 = vld [vmem:[%s2707_s15] sm:$0xff] }
 0x274   : > { %1156 = vmatpush.msra.mxu0 %v777_v31 }
 0x275   : > { %v854_v33 = vmul.f32 1.442695, %v852_v32 }
 0x277   : > { %2160 = vpow2.f32 %v854_v33  ;;  %v1008_v34 = vpop.xlane.xlu0 %1007 }
 0x278   : > { %v1012_v35 = vsub.f32 %v1004_v24, %v1008_v34 }
 0x27a   : > { %v895_v36 = vpop.permute.xlu2 %894  ;;  %v1014_v37 = vmul.f32 1.442695, %v1012_v35 }
 0x27b   : > { %915 = vmatpush.msra.mxu3 %v895_v36 }
 0x27c   : > { %2162 = vpow2.f32 %v1014_v37  ;;  %v778_v37 = vld [vmem:[%s2707_s15 + $0x8] sm:$0xff] }
 0x27d   : > { %v2161_v38 = vpop.eup %2160 }
 0x27e   : > { %v858_v39 = vsel %vm784_vm2, %v2161_v38, 0.0 }
 0x27f   : > { %859 = vadd.xlane.f32.xlu1 %v858_v39 }
 0x282   : > { %v921_v40 = vpop.permute.xlu2 %920  ;;  %v2792_v41 = vpop.eup %2162 }
 0x283   : > { %941 = vmatpush.msrb.mxu3 %v921_v40  ;;  %v1018_v42 = vsel %vm784_vm2, %v2792_v41, 0.0 }
 0x289   : > { %1019 = vadd.xlane.f32.xlu2 %v1018_v42 }
 0x28a   : > { %v977_v43 = vpop.permute.xlu0 %976 }
 0x28b   : > { %2017 = vmatpush.xpose.msk.msrb.mxu2 %vm784_vm2, %v977_v43 }
 0x28f   : > { %1127 = vmatpush.msra.mxu2 %v778_v37 }
 0x292   : > { %v1165_v30 = vpop.permute.xlu0 %1164 }
 0x298   : > { %974 = vrot.lane.b32.xlu1 %v2760_v12, %s2436_s23 }
 0x2bb   : > { %v851_v44 = vpop.xlane.xlu2 %850 }
 0x2bc   : > { %v853_v45 = vsub.f32 %v845_v29, %v851_v44 }
 0x2be   : > { %v856_v46 = vmul.f32 1.442695, %v853_v45 }
 0x2c0   : > { %2164 = vpow2.f32 %v856_v46 }
 0x2c3   : > { %v1055_v61 = vpop.permute.xlu2 %1054 }
 0x2c6   : > { %v2165_v47 = vpop.eup %2164 }
 0x2c7   : > { %v861_v48 = vsel %vm784_vm2, %v2165_v47, 0.0 }
 0x2c8   : > { %862 = vadd.xlane.f32.xlu2 %v861_v48 }
 0x2e0   : > { %1166 = vrot.lane.b32.xlu2 %v2755_v10, %s2440_s19 }
 0x2f2   : > { %v860_v49 = vpop.xlane.xlu1 %859 }
 0x2f3   : > { %2166 = vrcp.f32 %v860_v49  ;;  %v875_v53 = vand.u32 2147483648, %v860_v49  ;;  %v873_v55 = vand.u32 2147483647, %v860_v49  ;;  %vm869_vm4 = vweird.f32 %v860_v49 }
 0x2f5   : > { %v876_v57 = vor.u32 1.1754944e-38, %v875_v53  ;;  %vm874_vm6 = vcmp.eq.f32.partialorder %v873_v55, 8.507059e+37 }
 0x2f9   : > { %v2167_v50 = vpop.eup %2166 }
 0x2fa   : > { %v865_v51 = vmul.f32 %v2167_v50, %v860_v49  ;;  %vm870_vm3 = vweird.f32 %v2167_v50 }
 0x2fb   : > { %vm871_vm5 = vmor %vm869_vm4, %vm870_vm3 }
 0x2fc   : > { %v866_v52 = vsub.f32 1.0, %v865_v51  ;;  %v1020_v63 = vpop.xlane.xlu2 %1019 }
 0x2fd   : > { %2168 = vrcp.f32 %v1020_v63  ;;  %v1035_v20 = vand.u32 2147483648, %v1020_v63  ;;  %vm1029_vm12 = vweird.f32 %v1020_v63  ;;  %v1033_v22 = vand.u32 2147483647, %v1020_v63 }
 0x2fe   : > { %v867_v54 = vmul.f32 %v2167_v50, %v866_v52 }
 0x2ff   : > { %v1036_v26 = vor.u32 1.1754944e-38, %v1035_v20  ;;  %vm1034_vm14 = vcmp.eq.f32.partialorder %v1033_v22, 8.507059e+37 }
 0x300   : > { %v868_v56 = vadd.f32 %v2167_v50, %v867_v54 }
 0x302   : > { %v872_v58 = vsel %vm871_vm5, %v2167_v50, %v868_v56 }
 0x303   : > { %v877_v59 = vsel %vm874_vm6, %v876_v57, %v872_v58  ;;  %v2169_v1 = vpop.eup %2168 }
 0x304   : > { %v878_v60 = vmul.f32 %v2161_v38, %v877_v59  ;;  %v1025_v2 = vmul.f32 %v2169_v1, %v1020_v63  ;;  %vm1030_vm10 = vweird.f32 %v2169_v1 }
 0x305   : > { %vm1031_vm13 = vmor %vm1029_vm12, %vm1030_vm10 }
 0x306   : > { %2013 = vmatmul.msk.f32.vlgmr.msra.gmra.mxu3 %vm784_vm2, %v878_v60  ;;  %v1026_v4 = vsub.f32 1.0, %v1025_v2 }
 0x307   : > { %1075 = vmatpush.msra.mxu3 %v1055_v61 }
 0x308   : > { %v1027_v11 = vmul.f32 %v2169_v1, %v1026_v4 }
 0x30a   : > { %v975_v62 = vpop.permute.xlu1 %974  ;;  %v1028_v18 = vadd.f32 %v2169_v1, %v1027_v11 }
 0x30b   : > { %2018 = vmatmul.msk.f32.vlgmr.msrb.gmra.mxu2 %vm784_vm2, %v975_v62 }
 0x30c   : > { %v1032_v24 = vsel %vm1031_vm13, %v2169_v1, %v1028_v18 }
 0x30d   : > { %v1037_v27 = vsel %vm1034_vm14, %v1036_v26, %v1032_v24 }
 0x30e   : > { %v1038_v29 = vmul.f32 %v2792_v41, %v1037_v27 }
 0x33b   : > { %v863_v0 = vpop.xlane.xlu2 %862 }
 0x33c   : > { %2170 = vrcp.f32 %v863_v0  ;;  %v890_v9 = vand.u32 2147483648, %v863_v0  ;;  %v888_v14 = vand.u32 2147483647, %v863_v0  ;;  %vm884_vm8 = vweird.f32 %v863_v0 }
 0x33e   : > { %v891_v16 = vor.u32 1.1754944e-38, %v890_v9  ;;  %vm889_vm11 = vcmp.eq.f32.partialorder %v888_v14, 8.507059e+37 }
 0x342   : > { %v2171_v3 = vpop.eup %2170 }
 0x343   : > { %v880_v5 = vmul.f32 %v2171_v3, %v863_v0  ;;  %vm885_vm7 = vweird.f32 %v2171_v3  ;;  %v1167_v25 = vpop.permute.xlu2 %1166 }
 0x344   : > { %vm886_vm9 = vmor %vm884_vm8, %vm885_vm7 }
 0x345   : > { %v881_v8 = vsub.f32 1.0, %v880_v5 }
 0x347   : > { %v882_v13 = vmul.f32 %v2171_v3, %v881_v8 }
 0x349   : > { %v883_v15 = vadd.f32 %v2171_v3, %v882_v13 }
 0x34b   : > { %v887_v19 = vsel %vm886_vm9, %v2171_v3, %v883_v15 }
 0x34c   : > { %v892_v21 = vsel %vm889_vm11, %v891_v16, %v887_v19 }
 0x34d   : > { %v893_v23 = vmul.f32 %v2165_v47, %v892_v21 }
 0x34f   : > { %2014 = vmatmul.msk.f32.vlgmr.msrb.gmra.mxu3 %vm784_vm2, %v893_v23 }
 0x350   : > { %2025 = vmatpush.xpose.msk.msrb.mxu3 %vm784_vm2, %v1167_v25 }
 0x357   : > { %2019 = vmatmul.msk.f32.vlgmr.msra.gmra.mxu3 %vm784_vm2, %v1038_v29 }
 0x35f   : > { %2026 = vmatmul.msk.f32.vlgmr.msrb.gmra.mxu3 %vm784_vm2, %v1165_v30 }
 0x389   : > { %v917_v32 = vpop.f32.mrf.mxu3 }
 0x38a   : > { %2023 = vmatmul.msk.f32.vlgmr.msra.gmra.mxu0 %vm784_vm2, %v917_v32 }
 0x38e   : > { %v999_v33 = vpop.f32.mrf.mxu2 }
 0x38f   : > { %v1003_v34 = vmul.f32 0.35355338, %v999_v33 }
 0x391   : > { %v1005_v35 = vadd.f32 %v2785_v28, %v1003_v34 }
 0x393   : > { %v1009_v36 = vsel %vm784_vm2, %v1005_v35, -inf }
 0x394   : > { %1010 = vmax.xlane.f32.xlu2 %v1009_v36 }
 0x3ac   : > { %1192 = vrot.lane.b32.xlu2 %v2760_v12, %s2438_s29  ;;  %s1772_s29 = scalar_lea.hbm %s3038_s21, %s2054_s26 }
 0x3d2   : > { %v943_v38 = vpop.f32.mrf.mxu3 }
 0x3d3   : > { %2024 = vmatmul.msk.f32.gmra.mxu0 %vm784_vm2, %v943_v38 }
 0x3da   : > { %v1077_v39 = vpop.f32.mrf.mxu3 }
 0x3db   : > { %2021 = vmatmul.msk.f32.vlgmr.msra.gmra.mxu2 %vm784_vm2, %v1077_v39  ;;  %v779_v39 = vld [vmem:[%s2707_s15 + $0x10] sm:$0xff] }
 0x3dc   : > { %1345 = vmatpush.msrb.mxu2 %v779_v39  ;;  %v780_v39 = vld [vmem:[%s2707_s15 + $0x18] sm:$0xff]  ;;  %s2372_s15 = scalar_lea.hbm %s3038_s21, 32 }
 0x3e2   : > { %v1189_v40 = vpop.f32.mrf.mxu3 }
 0x3e3   : > { %v1220_v41 = vmul.f32 0.35355338, %v1189_v40 }
 0x3e5   : > { %v1222_v42 = vadd.f32 %v2773_v17, %v1220_v41 }
 0x3e7   : > { %v1224_v43 = vsel %vm784_vm2, %v1222_v42, -inf }
 0x3e8   : > { %1225 = vmax.xlane.f32.xlu1 %v1224_v43 }
 0x401   : > { %1080 = vrot.lane.b32.xlu1 %v2760_v12, %s2439_s5 }
 0x407   : > { %v1011_v44 = vpop.xlane.xlu2 %1010  ;;  %v2840_v27 = vpop.f32.mrf.mxu0 }
 0x408   : > { %v1013_v45 = vsub.f32 %v1005_v35, %v1011_v44 }
 0x409   : > { %1357 = vrot.lane.b32.xlu1 %v2755_v10, %s2441_s18 }
 0x40a   : > { %v1016_v46 = vmul.f32 1.442695, %v1013_v45 }
 0x40c   : > { %2172 = vpow2.f32 %v1016_v46 }
 0x40f   : > { %v1193_v5 = vpop.permute.xlu2 %1192 }
 0x411   : > { %1383 = vrot.lane.b32.xlu1 %v2760_v12, %s2442_s28 }
 0x412   : > { %v2173_v47 = vpop.eup %2172 }
 0x413   : > { %v1021_v48 = vsel %vm784_vm2, %v2173_v47, 0.0 }
 0x414   : > { %1022 = vadd.xlane.f32.xlu0 %v1021_v48 }
 0x428   : > { %1194 = vrot.lane.b32.xlu0 %v2760_v12, %s2440_s19  ;;  %s1773_s19 = sshll.u32 %s2738_s8, 4  ;;  %s1774_s19 = int_to_ptr.vmem [resolvable:$true] %s1773_s19 }
 0x430   : > { %1272 = vrot.lane.b32.xlu0 %v2755_v10, %s2443_s20 }
 0x438   : > { %1355 = vrot.lane.b32.xlu0 %v2755_v10, %s2442_s28 }
 0x450   : > { %v2843_v30 = vpop.f32.mrf.mxu0 }
 0x45b   : > { %v1226_v49 = vpop.xlane.xlu1 %1225 }
 0x45c   : > { %v1230_v50 = vsub.f32 %v1222_v42, %v1226_v49 }
 0x45e   : > { %v1232_v51 = vmul.f32 1.442695, %v1230_v50 }
 0x460   : > { %2174 = vpow2.f32 %v1232_v51 }
 0x466   : > { %v2175_v52 = vpop.eup %2174 }
 0x467   : > { %v1236_v53 = vsel %vm784_vm2, %v2175_v52, 0.0 }
 0x468   : > { %1237 = vadd.xlane.f32.xlu2 %v1236_v53 }
 0x473   : > { %v1081_v54 = vpop.permute.xlu1 %1080 }
 0x474   : > { %1101 = vmatpush.msrb.mxu1 %v1081_v54 }
 0x47b   : > { %v1358_v55 = vpop.permute.xlu1 %1357 }
 0x47c   : > { %2033 = vmatpush.xpose.msk.msrb.mxu0 %vm784_vm2, %v1358_v55 }
 0x480   : > { %1385 = vrot.lane.b32.xlu2 %v2760_v12, %s2441_s18  ;;  %s1775_s18 = sshll.u32 %s1772_s29, 4  ;;  %s1776_s18 = int_to_ptr.hbm [resolvable:$true] %s1775_s18 }
 0x481   : > { %s2366_s28 = sshra.s32 %s1776_s18, 4  ;;  %s2367_s28 = int_to_ptr.hbm [resolvable:$true] %s2366_s28 }
 0x482   : > { %p2373_p2 = scmp.lt.s32.totalorder %s2367_s28, %s3038_s21 }
 0x483   : > { %v1384_v26 = vpop.permute.xlu1 %1383 }
 0x487   : > { %v1023_v56 = vpop.xlane.xlu0 %1022 }
 0x488   : > { %2176 = vrcp.f32 %v1023_v56  ;;  %v1050_v60 = vand.u32 2147483648, %v1023_v56  ;;  %v1048_v62 = vand.u32 2147483647, %v1023_v56  ;;  %vm1044_vm0 = vweird.f32 %v1023_v56 }
 0x48a   : > { %v1051_v0 = vor.u32 1.1754944e-38, %v1050_v60  ;;  %vm1049_vm4 = vcmp.eq.f32.partialorder %v1048_v62, 8.507059e+37 }
 0x48e   : > { %v2177_v57 = vpop.eup %2176 }
 0x48f   : > { %v1040_v58 = vmul.f32 %v2177_v57, %v1023_v56  ;;  %vm1045_vm15 = vweird.f32 %v2177_v57 }
 0x490   : > { %vm1046_vm3 = vmor %vm1044_vm0, %vm1045_vm15 }
 0x491   : > { %v1041_v59 = vsub.f32 1.0, %v1040_v58 }
 0x493   : > { %v1042_v61 = vmul.f32 %v2177_v57, %v1041_v59 }
 0x495   : > { %v1043_v63 = vadd.f32 %v2177_v57, %v1042_v61 }
 0x497   : > { %v1047_v1 = vsel %vm1046_vm3, %v2177_v57, %v1043_v63 }
 0x498   : > { %v1052_v2 = vsel %vm1049_vm4, %v1051_v0, %v1047_v1 }
 0x499   : > { %v1053_v3 = vmul.f32 %v2173_v47, %v1052_v2 }
 0x49a   : > { %v1195_v4 = vpop.permute.xlu0 %1194 }
 0x49b   : > { %2020 = vmatmul.msk.f32.vlgmr.msrb.gmra.mxu1 %vm784_vm2, %v1053_v3 }
 0x49c   : > { %2027 = vmatpush.xpose.msk.msra.mxu1 %vm784_vm2, %v1195_v4 }
 0x4a2   : > { %v1273_v8 = vpop.permute.xlu0 %1272 }
 0x4a3   : > { %2028 = vmatmul.msk.f32.vlgmr.msra.gmra.mxu1 %vm784_vm2, %v1193_v5  ;;  %1293 = vmatpush.msra.mxu3 %v1273_v8 }
 0x4aa   : > { %v1356_v9 = vpop.permute.xlu0 %1355 }
 0x4ab   : > { %2034 = vmatmul.msk.f32.vlgmr.msrb.gmra.mxu0 %vm784_vm2, %v1356_v9 }
 0x4db   : > { %v1238_v11 = vpop.xlane.xlu2 %1237 }
 0x4dc   : > { %2178 = vrcp.f32 %v1238_v11  ;;  %v1253_v18 = vand.u32 2147483648, %v1238_v11  ;;  %v1251_v20 = vand.u32 2147483647, %v1238_v11  ;;  %vm1247_vm6 = vweird.f32 %v1238_v11 }
 0x4de   : > { %v1254_v22 = vor.u32 1.1754944e-38, %v1253_v18  ;;  %vm1252_vm8 = vcmp.eq.f32.partialorder %v1251_v20, 8.507059e+37 }
 0x4e2   : > { %v2179_v13 = vpop.eup %2178 }
 0x4e3   : > { %v1243_v14 = vmul.f32 %v2179_v13, %v1238_v11  ;;  %v1386_v15 = vpop.permute.xlu2 %1385  ;;  %vm1248_vm5 = vweird.f32 %v2179_v13 }
 0x4e4   : > { %2035 = vmatpush.xpose.msk.msrb.mxu3 %vm784_vm2, %v1386_v15  ;;  %vm1249_vm7 = vmor %vm1247_vm6, %vm1248_vm5 }
 0x4e5   : > { %v1244_v16 = vsub.f32 1.0, %v1243_v14 }
 0x4e7   : > { %v1245_v19 = vmul.f32 %v2179_v13, %v1244_v16 }
 0x4e9   : > { %v1246_v21 = vadd.f32 %v2179_v13, %v1245_v19 }
 0x4eb   : > { %v1250_v23 = vsel %vm1249_vm7, %v2179_v13, %v1246_v21 }
 0x4ec   : > { %v1255_v24 = vsel %vm1252_vm8, %v1254_v22, %v1250_v23 }
 0x4ed   : > { %v1256_v25 = vmul.f32 %v2175_v52, %v1255_v24 }
 0x4ef   : > { %2029 = vmatmul.msk.f32.vlgmr.msra.gmra.mxu3 %vm784_vm2, %v1256_v25 }
 0x4f0   : > { %1536 = vmatpush.msra.mxu3 %v780_v39  ;;  %v1660_v39 = vld [vmem:[%s2726_s22 + $0x20] sm:$0xff] }
 0x4f7   : > { %2036 = vmatmul.msk.f32.vlgmr.msrb.gmra.mxu3 %vm784_vm2, %v1384_v26 }
 0x518   : > { %v1103_v29 = vpop.f32.mrf.mxu1 }
 0x519   : > { %2022 = vmatmul.msk.f32.gmra.mxu2 %vm784_vm2, %v1103_v29 }
 0x520   : > { %v1217_v31 = vpop.f32.mrf.mxu1 }
 0x521   : > { %v1221_v32 = vmul.f32 0.35355338, %v1217_v31 }
 0x523   : > { %v1223_v33 = vadd.f32 %v2785_v28, %v1221_v32 }
 0x525   : > { %v1227_v34 = vsel %vm784_vm2, %v1223_v33, -inf }
 0x526   : > { %1228 = vmax.xlane.f32.xlu2 %v1227_v34 }
 0x528   : > { %v1380_v35 = vpop.f32.mrf.mxu0 }
 0x529   : > { %v1411_v36 = vmul.f32 0.35355338, %v1380_v35 }
 0x52b   : > { %v1413_v37 = vadd.f32 %v2773_v17, %v1411_v36 }
 0x52d   : > { %v1415_v38 = vsel %vm784_vm2, %v1413_v37, -inf }
 0x52e   : > { %1416 = vmax.xlane.f32.xlu0 %v1415_v38 }
 0x572   : > { %v1295_v40 = vpop.f32.mrf.mxu3 }
 0x573   : > { %2031 = vmatmul.msk.f32.vlgmr.msrb.gmra.mxu2 %vm784_vm2, %v1295_v40 }
 0x57a   : > { %v1408_v41 = vpop.f32.mrf.mxu3 }
 0x57b   : > { %v1412_v42 = vmul.f32 0.35355338, %v1408_v41 }
 0x57d   : > { %v1414_v43 = vadd.f32 %v2785_v28, %v1412_v42 }
 0x57f   : > { %v1418_v44 = vsel %vm784_vm2, %v1414_v43, -inf }
 0x580   : > { %1419 = vmax.xlane.f32.xlu1 %v1418_v44 }
 0x599   : > { %v1229_v45 = vpop.xlane.xlu2 %1228 }
 0x59a   : > { %v1231_v46 = vsub.f32 %v1223_v33, %v1229_v45 }
 0x59c   : > { %v1234_v47 = vmul.f32 1.442695, %v1231_v46 }
 0x59e   : > { %2180 = vpow2.f32 %v1234_v47 }
 0x5a1   : > { %v1417_v17 = vpop.xlane.xlu0 %1416 }
 0x5a2   : > { %v1421_v48 = vsub.f32 %v1413_v37, %v1417_v17  ;;  %v2153_v17 = vld [vmem:[%s3034_s2] ss:$0 sm:$0xff] }
 0x5a4   : > { %v2181_v49 = vpop.eup %2180  ;;  %v1423_v50 = vmul.f32 1.442695, %v1421_v48 }
 0x5a5   : > { %v1239_v51 = vsel %vm784_vm2, %v2181_v49, 0.0 }
 0x5a6   : > { %2182 = vpow2.f32 %v1423_v50  ;;  %1240 = vadd.xlane.f32.xlu2 %v1239_v51 }
 0x5ac   : > { %v2183_v52 = vpop.eup %2182 }
 0x5ad   : > { %v1427_v53 = vsel %vm784_vm2, %v2183_v52, 0.0 }
 0x5ae   : > { %1428 = vadd.xlane.f32.xlu0 %v1427_v53 }
 0x5be   : > { %1298 = vrot.lane.b32.xlu2 %v2760_v12, %s2443_s20  ;;  %s2368_s20 = scalar_lea.hbm %s2367_s28, 16 }
 0x5bf   : > { %p2369_p13 = scmp.ne.s32.totalorder %s2367_s28, %s2368_s20  ;;  %p2374_p3 = scmp.lt.s32.totalorder %s2372_s15, %s2368_s20 }
 0x5c1   : > { %p2370_p12 = pnand %p2369_p13, %p2597_p10  ;;  %p2375_p5 = por %p2374_p3, %p2373_p2 }
 0x5c2   : > { %1463 = vrot.lane.b32.xlu0 %v2755_v10, %s2444_s10 }
 0x5c3   : > { %p2371_p11 = pneg %p2370_p12 }
 0x5c5   : > { %p2376_p0 = pnand %p2375_p5, %p2371_p11 }
 0x5f3   : > { %v1420_v28 = vpop.xlane.xlu1 %1419 }
 0x5f4   : > { %v1422_v54 = vsub.f32 %v1414_v43, %v1420_v28  ;;  %v1129_v43 = vpop.f32.mrf.mxu2 }
 0x5f5   : > { %v1159_v46 = vadd.f32 %v2840_v27, %v1129_v43 }
 0x5f6   : > { %v1425_v55 = vmul.f32 1.442695, %v1422_v54 }
 0x5f8   : > { %2184 = vpow2.f32 %v1425_v55 }
 0x5fc   : > { %v1132_v44 = vpop.f32.mrf.mxu2 }
 0x5fd   : > { %v1162_v28 = vadd.f32 %v2843_v30, %v1132_v44 }
 0x5fe   : > { %v2185_v56 = vpop.eup %2184 }
 0x5ff   : > { %v1430_v57 = vsel %vm784_vm2, %v2185_v56, 0.0 }
 0x600   : > { %1431 = vadd.xlane.f32.xlu1 %v1430_v57 }
 0x604   : > { %v1347_v45 = vpop.f32.mrf.mxu2 }
 0x605   : > { %v1353_v47 = vadd.f32 %v1347_v45, %v1159_v46 }
 0x619   : > { %v1241_v58 = vpop.xlane.xlu2 %1240  ;;  %1489 = vrot.lane.b32.xlu1 %v2760_v12, %s2444_s10 }
 0x61a   : > { %2186 = vrcp.f32 %v1241_v58  ;;  %v1268_v10 = vand.u32 2147483648, %v1241_v58  ;;  %v1266_v1 = vand.u32 2147483647, %v1241_v58  ;;  %vm1262_vm10 = vweird.f32 %v1241_v58 }
 0x61c   : > { %v1269_v4 = vor.u32 1.1754944e-38, %v1268_v10  ;;  %vm1267_vm12 = vcmp.eq.f32.partialorder %v1266_v1, 8.507059e+37 }
 0x620   : > { %v2187_v59 = vpop.eup %2186 }
 0x621   : > { %v1258_v60 = vmul.f32 %v2187_v59, %v1241_v58  ;;  %v1299_v61 = vpop.permute.xlu2 %1298  ;;  %v1429_v62 = vpop.xlane.xlu0 %1428  ;;  %vm1263_vm9 = vweird.f32 %v2187_v59 }
 0x622   : > { %2188 = vrcp.f32 %v1429_v62  ;;  %1319 = vmatpush.msrb.mxu1 %v1299_v61  ;;  %vm1264_vm11 = vmor %vm1262_vm10, %vm1263_vm9  ;;  %v1444_v13 = vand.u32 2147483648, %v1429_v62  ;;  %v1442_v15 = vand.u32 2147483647, %v1429_v62  ;;  %vm1438_vm14 = vweird.f32 %v1429_v62 }
 0x623   : > { %v1259_v63 = vsub.f32 1.0, %v1258_v60 }
 0x624   : > { %v1445_v18 = vor.u32 1.1754944e-38, %v1444_v13  ;;  %vm1443_vm0 = vcmp.eq.f32.partialorder %v1442_v15, 8.507059e+37  ;;  %v1618_v13 = vld [vmem:[%s2716_s24 + $0x8] sm:$0xff] }
 0x625   : > { %v1260_v0 = vmul.f32 %v2187_v59, %v1259_v63 }
 0x627   : > { %v1261_v2 = vadd.f32 %v2187_v59, %v1260_v0 }
 0x628   : > { %v2189_v3 = vpop.eup %2188 }
 0x629   : > { %v1265_v5 = vsel %vm1264_vm11, %v2187_v59, %v1261_v2  ;;  %v1434_v12 = vmul.f32 %v2189_v3, %v1429_v62  ;;  %vm1439_vm13 = vweird.f32 %v2189_v3  ;;  %v2445_v59 = vmov 32.0  }
 0x62a   : > { %v1270_v8 = vsel %vm1267_vm12, %v1269_v4, %v1265_v5  ;;  %vm1440_vm15 = vmor %vm1438_vm14, %vm1439_vm13  ;;  %vm1668_vm13 = vcmask 523264  }
 0x62b   : > { %v1435_v9 = vsub.f32 1.0, %v1434_v12  ;;  %v1271_v11 = vmul.f32 %v2181_v49, %v1270_v8 }
 0x62d   : > { %v1436_v14 = vmul.f32 %v2189_v3, %v1435_v9  ;;  %2030 = vmatmul.msk.f32.vlgmr.msrb.gmra.mxu1 %vm784_vm2, %v1271_v11  ;;  %v1620_v9 = vld [vmem:[%s2716_s24 + $0x18] sm:$0xff]  ;;  %v1619_v11 = vld [vmem:[%s2716_s24 + $0x10] sm:$0xff] }
 0x62f   : > { %v1437_v16 = vadd.f32 %v2189_v3, %v1436_v14  ;;  %v1617_v14 = vld [vmem:[%s2716_s24] sm:$0xff] }
 0x631   : > { %v1441_v19 = vsel %vm1440_vm15, %v2189_v3, %v1437_v16 }
 0x632   : > { %v1446_v20 = vsel %vm1443_vm0, %v1445_v18, %v1441_v19 }
 0x633   : > { %v1447_v21 = vmul.f32 %v2183_v52, %v1446_v20 }
 0x634   : > { %v1464_v22 = vpop.permute.xlu0 %1463 }
 0x635   : > { %1484 = vmatpush.msra.mxu1 %v1464_v22 }
 0x636   : > { %2037 = vmatmul.msk.f32.vlgmr.msra.gmra.mxu1 %vm784_vm2, %v1447_v21 }
 0x637   : > { %1643 = vmatpush.msrb.mxu1 %v1620_v9 }
 0x639   : > { %1644 = vmatpush.msrb.mxu1 %v1619_v11 }
 0x63b   : > { %1645 = vmatpush.msrb.mxu1 %v1618_v13 }
 0x63d   : > { %1646 = vmatpush.msrb.mxu1 %v1617_v14 }
 0x673   : > { %v1432_v23 = vpop.xlane.xlu1 %1431 }
 0x674   : > { %2190 = vrcp.f32 %v1432_v23  ;;  %v1459_v32 = vand.u32 2147483648, %v1432_v23  ;;  %vm1453_vm4 = vweird.f32 %v1432_v23  ;;  %v1457_v33 = vand.u32 2147483647, %v1432_v23 }
 0x675   : > { %2192 = vrcp.f32 %v2445_v59  ;;  %v2157_v59 = vld [vmem:[%s722_s27] ss:$0 sm:$0xff] }
 0x676   : > { %v1460_v35 = vor.u32 1.1754944e-38, %v1459_v32  ;;  %vm1458_vm6 = vcmp.eq.f32.partialorder %v1457_v33, 8.507059e+37 }
 0x67a   : > { %v2191_v24 = vpop.eup %2190 }
 0x67b   : > { %v1449_v25 = vmul.f32 %v2191_v24, %v1432_v23  ;;  %vm1454_vm3 = vweird.f32 %v2191_v24  ;;  %v2193_v60 = vpop.eup %2192 }
 0x67c   : > { %vm1455_vm5 = vmor %vm1453_vm4, %vm1454_vm3  ;;  %v1561_v61 = vmul.f32 32.0, %v2193_v60 }
 0x67d   : > { %v1450_v26 = vsub.f32 1.0, %v1449_v25  ;;  %v2154_v25 = vld [vmem:[%s3035_s4] ss:$0 sm:$0xff] }
 0x67f   : > { %v1451_v29 = vmul.f32 %v2191_v24, %v1450_v26 }
 0x681   : > { %v1452_v31 = vadd.f32 %v2191_v24, %v1451_v29 }
 0x683   : > { %v1456_v34 = vsel %vm1455_vm5, %v2191_v24, %v1452_v31  ;;  %v2155_v31 = vld [vmem:[%s594_s0] ss:$0 sm:$0xff] }
 0x684   : > { %v1461_v36 = vsel %vm1458_vm6, %v1460_v35, %v1456_v34  ;;  %v1663_v34 = vld [vmem:[%s2726_s22 + $0x38] sm:$0xff]  ;;  %v1662_v35 = vld [vmem:[%s2726_s22 + $0x30] sm:$0xff] }
 0x685   : > { %v1462_v38 = vmul.f32 %v2185_v56, %v1461_v36  ;;  %1683 = vmatpush.msra.mxu2 %v1663_v34  ;;  %v1661_v36 = vld [vmem:[%s2726_s22 + $0x28] sm:$0xff] }
 0x687   : > { %1684 = vmatpush.msra.mxu2 %v1662_v35 }
 0x689   : > { %1685 = vmatpush.msra.mxu2 %v1661_v36 }
 0x68b   : > { %v1490_v37 = vpop.permute.xlu1 %1489  ;;  %1686 = vmatpush.msra.mxu2 %v1660_v39 }
 0x68c   : > { %1510 = vmatpush.msra.mxu0 %v1490_v37 }
 0x68d   : > { %2038 = vmatmul.msk.f32.vlgmr.msra.gmra.mxu0 %vm784_vm2, %v1462_v38 }
 0x6aa   : > { %v1321_v40 = vpop.f32.mrf.mxu1 }
 0x6ab   : > { %2032 = vmatmul.msk.f32.gmra.mxu2 %vm784_vm2, %v1321_v40 }
 0x6b3   : > { %v1486_v41 = vpop.f32.mrf.mxu1 }
 0x6b4   : > { %2039 = vmatmul.msk.f32.vlgmr.msra.gmra.mxu3 %vm784_vm2, %v1486_v41  ;;  %v1659_v41 = vld [vmem:[%s2726_s22 + $0x18] sm:$0xff] }
 0x6b5   : > { %1687 = vmatpush.msra.mxu2 %v1659_v41 }
 0x70a   : > { %v1512_v42 = vpop.f32.mrf.mxu0 }
 0x70b   : > { %2040 = vmatmul.msk.f32.gmra.mxu3 %vm784_vm2, %v1512_v42  ;;  %vm1565_vm2 = vweird.f32 %v2193_v60 }
 0x72e   : > { %v1350_v53 = vpop.f32.mrf.mxu2 }
 0x72f   : > { %v1354_v54 = vadd.f32 %v1350_v53, %v1162_v28  ;;  %v1656_v53 = vld [vmem:[%s2726_s22] sm:$0xff] }
 0x730   : > { %v2156_v28 = vld [vmem:[%s714_s25] ss:$0 sm:$0xff] }
 0x737   : > { %v1538_v48 = vpop.f32.mrf.mxu3 }
 0x738   : > { %v1544_v49 = vadd.f32 %v1538_v48, %v1353_v47 }
 0x73a   : > { %v1550_v50 = vadd.f32 %v2153_v17, %v1544_v49 }
 0x73c   : > { %v1552_v51 = vadd.f32 %v1550_v50, %v2742_v6  ;;  %v1562_v6 = vsub.f32 1.0, %v1561_v61 }
 0x73e   : > { %v1554_v52 = vsel %vm747_vm1, %v1552_v51, 0.0  ;;  %v1563_v62 = vmul.f32 %v2193_v60, %v1562_v6 }
 0x73f   : > { %1555 = vadd.xlane.f32.xlu0 %v1554_v52  ;;  %v1657_v52 = vld [vmem:[%s2726_s22 + $0x8] sm:$0xff] }
 0x740   : > { %v1564_v63 = vadd.f32 %v2193_v60, %v1563_v62 }
 0x742   : > { %v2875_v30 = vsel %vm1565_vm2, %v2193_v60, %v1564_v63 }
 0x78e   : > { %v1541_v55 = vpop.f32.mrf.mxu3 }
 0x78f   : > { %v1545_v56 = vadd.f32 %v1541_v55, %v1354_v54 }
 0x791   : > { %v1551_v57 = vadd.f32 %v2153_v17, %v1545_v56 }
 0x793   : > { %v1553_v27 = vadd.f32 %v1551_v57, %v2746_v7 }
 0x795   : > { %v1557_v58 = vsel %vm747_vm1, %v1553_v27, 0.0 }
 0x796   : > { %1558 = vadd.xlane.f32.xlu2 %v1557_v58 }
 0x7b2   : > { %v1556_v10 = vpop.xlane.xlu0 %1555 }
 0x7b3   : > { %v1567_v0 = vmul.f32 %v2875_v30, %v1556_v10 }
 0x7b5   : > { %v1569_v7 = vsub.f32 %v1552_v51, %v1567_v0  ;;  %v1658_v51 = vld [vmem:[%s2726_s22 + $0x10] sm:$0xff] }
 0x7b6   : > { %1688 = vmatpush.msra.mxu2 %v1658_v51 }
 0x7b7   : > { %v1571_v1 = vmul.f32 %v1569_v7, %v1569_v7 }
 0x7b8   : > { %1689 = vmatpush.msra.mxu2 %v1657_v52 }
 0x7b9   : > { %v1573_v2 = vsel %vm747_vm1, %v1571_v1, 0.0 }
 0x7ba   : > { %1574 = vadd.xlane.f32.xlu1 %v1573_v2  ;;  %1690 = vmatpush.msra.mxu2 %v1656_v53 }
 0x809   : > { %v1559_v3 = vpop.xlane.xlu2 %1558 }
 0x80a   : > { %v1568_v4 = vmul.f32 %v2875_v30, %v1559_v3 }
 0x80c   : > { %v1570_v5 = vsub.f32 %v1553_v27, %v1568_v4 }
 0x80e   : > { %v1572_v12 = vmul.f32 %v1570_v5, %v1570_v5 }
 0x810   : > { %v1576_v8 = vsel %vm747_vm1, %v1572_v12, 0.0 }
 0x811   : > { %1577 = vadd.xlane.f32.xlu2 %v1576_v8 }
 0x82d   : > { %v1575_v15 = vpop.xlane.xlu1 %1574 }
 0x82e   : > { %v1579_v16 = vmul.f32 %v1575_v15, %v2875_v30 }
 0x830   : > { %v1581_v18 = vadd.f32 1e-05, %v1579_v16 }
 0x832   : > { %2194 = vrsqrt.f32 %v1581_v18  ;;  %vm1589_vm8 = vweird.f32 %v1581_v18 }
 0x838   : > { %v2195_v19 = vpop.eup %2194 }
 0x839   : > { %v1584_v20 = vmul.f32 %v2195_v19, %v1581_v18  ;;  %vm1590_vm7 = vweird.f32 %v2195_v19 }
 0x83a   : > { %vm1591_vm9 = vmor %vm1589_vm8, %vm1590_vm7 }
 0x83b   : > { %v1585_v21 = vmul.f32 %v2195_v19, %v1584_v20 }
 0x83d   : > { %v1586_v22 = vmul.f32 0.5, %v1585_v21 }
 0x83f   : > { %v1587_v23 = vsub.f32 1.5, %v1586_v22 }
 0x841   : > { %v1588_v24 = vmul.f32 %v2195_v19, %v1587_v23 }
 0x843   : > { %v1592_v26 = vsel %vm1591_vm9, %v2195_v19, %v1588_v24  ;;  %v2158_v24 = vld [vmem:[%s725_s11] ss:$0 sm:$0xff] }
 0x844   : > { %v1603_v29 = vmul.f32 %v1592_v26, %v1569_v7 }
 0x846   : > { %v1609_v32 = vmul.f32 %v2154_v25, %v1603_v29  ;;  %v2159_v29 = vld [vmem:[%s603_s1] ss:$0 sm:$0xff] }
 0x848   : > { %v1615_v33 = vadd.f32 %v2155_v31, %v1609_v32 }
 0x84a   : > { %2041 = vmatmul.msk.f32.vlgmr.msrb.gmra.mxu1 %vm747_vm1, %v1615_v33 }
 0x884   : > { %v1578_v37 = vpop.xlane.xlu2 %1577 }
 0x885   : > { %v1580_v38 = vmul.f32 %v1578_v37, %v2875_v30 }
 0x887   : > { %v1582_v40 = vadd.f32 1e-05, %v1580_v38 }
 0x889   : > { %2196 = vrsqrt.f32 %v1582_v40  ;;  %vm1599_vm11 = vweird.f32 %v1582_v40 }
 0x88f   : > { %v2197_v42 = vpop.eup %2196 }
 0x890   : > { %v1594_v43 = vmul.f32 %v2197_v42, %v1582_v40  ;;  %vm1600_vm10 = vweird.f32 %v2197_v42 }
 0x891   : > { %vm1601_vm12 = vmor %vm1599_vm11, %vm1600_vm10 }
 0x892   : > { %v1595_v44 = vmul.f32 %v2197_v42, %v1594_v43 }
 0x894   : > { %v1596_v45 = vmul.f32 0.5, %v1595_v44 }
 0x896   : > { %v1597_v46 = vsub.f32 1.5, %v1596_v45 }
 0x898   : > { %v1598_v47 = vmul.f32 %v2197_v42, %v1597_v46 }
 0x89a   : > { %v1602_v17 = vsel %vm1601_vm12, %v2197_v42, %v1598_v47 }
 0x89b   : > { %v1604_v48 = vmul.f32 %v1602_v17, %v1570_v5 }
 0x89d   : > { %v1610_v49 = vmul.f32 %v2154_v25, %v1604_v48 }
 0x89f   : > { %v1616_v50 = vadd.f32 %v2155_v31, %v1610_v49 }
 0x8a1   : > { %2042 = vmatmul.msk.f32.gmra.mxu1 %vm747_vm1, %v1616_v50 }
 0x8c7   : > { %v1648_v54 = vpop.f32.mrf.mxu1 }
 0x8c8   : > { %v1649_v55 = vadd.f32 %v2156_v28, %v1648_v54 }
 0x8ca   : > { %v1654_v56 = vmax.f32 %v1649_v55, 0.0 }
 0x8cc   : > { %2043 = vmatmul.msk.f32.vlgmr.msra.gmra.mxu2 %vm1668_vm13, %v1654_v56 }
 0x91e   : > { %v1651_v57 = vpop.f32.mrf.mxu1 }
 0x91f   : > { %v1652_v27 = vadd.f32 %v2156_v28, %v1651_v57 }
 0x921   : > { %v1655_v58 = vmax.f32 %v1652_v27, 0.0 }
 0x923   : > { %2044 = vmatmul.msk.f32.gmra.mxu2 %vm1668_vm13, %v1655_v58 }
 0x94f   : > { %v1692_v60 = vpop.f32.mrf.mxu2 }
 0x950   : > { %v1693_v61 = vadd.f32 %v2157_v59, %v1692_v60 }
 0x952   : > { %v1698_v6 = vadd.f32 %v1693_v61, %v1615_v33 }
 0x954   : > { %v1700_v62 = vsel %vm747_vm1, %v1698_v6, 0.0 }
 0x955   : > { %1701 = vadd.xlane.f32.xlu0 %v1700_v62 }
 0x9a6   : > { %v1695_v63 = vpop.f32.mrf.mxu2 }
 0x9a7   : > { %v1696_v10 = vadd.f32 %v2157_v59, %v1695_v63 }
 0x9a9   : > { %v1699_v0 = vadd.f32 %v1696_v10, %v1616_v50 }
 0x9ab   : > { %v1703_v7 = vsel %vm747_vm1, %v1699_v0, 0.0 }
 0x9ac   : > { %1704 = vadd.xlane.f32.xlu1 %v1703_v7 }
 0x9c8   : > { %v1702_v1 = vpop.xlane.xlu0 %1701 }
 0x9c9   : > { %v1706_v2 = vmul.f32 %v1702_v1, %v2875_v30 }
 0x9cb   : > { %v1708_v3 = vsub.f32 %v1698_v6, %v1706_v2 }
 0x9cd   : > { %v1710_v4 = vmul.f32 %v1708_v3, %v1708_v3 }
 0x9cf   : > { %v1712_v5 = vsel %vm747_vm1, %v1710_v4, 0.0 }
 0x9d0   : > { %1713 = vadd.xlane.f32.xlu2 %v1712_v5 }
 0xa1f   : > { %v1705_v12 = vpop.xlane.xlu1 %1704 }
 0xa20   : > { %v1707_v8 = vmul.f32 %v1705_v12, %v2875_v30 }
 0xa22   : > { %v1709_v9 = vsub.f32 %v1699_v0, %v1707_v8 }
 0xa24   : > { %v1711_v11 = vmul.f32 %v1709_v9, %v1709_v9 }
 0xa26   : > { %v1715_v13 = vsel %vm747_vm1, %v1711_v11, 0.0 }
 0xa27   : > { %1716 = vadd.xlane.f32.xlu0 %v1715_v13 }
 0xa43   : > { %v1714_v14 = vpop.xlane.xlu2 %1713 }
 0xa44   : > { %v1718_v15 = vmul.f32 %v1714_v14, %v2875_v30 }
 0xa46   : > { %v1720_v16 = vadd.f32 1e-05, %v1718_v15 }
 0xa48   : > { %2198 = vrsqrt.f32 %v1720_v16  ;;  %vm1728_vm15 = vweird.f32 %v1720_v16 }
 0xa4e   : > { %v2199_v18 = vpop.eup %2198 }
 0xa4f   : > { %v1723_v19 = vmul.f32 %v2199_v18, %v1720_v16  ;;  %vm1729_vm14 = vweird.f32 %v2199_v18 }
 0xa50   : > { %vm1730_vm0 = vmor %vm1728_vm15, %vm1729_vm14 }
 0xa51   : > { %v1724_v20 = vmul.f32 %v2199_v18, %v1723_v19 }
 0xa53   : > { %v1725_v21 = vmul.f32 0.5, %v1724_v20 }
 0xa55   : > { %v1726_v22 = vsub.f32 1.5, %v1725_v21 }
 0xa57   : > { %v1727_v23 = vmul.f32 %v2199_v18, %v1726_v22 }
 0xa59   : > { %v1731_v25 = vsel %vm1730_vm0, %v2199_v18, %v1727_v23 }
 0xa5a   : > { %v1742_v26 = vmul.f32 %v1731_v25, %v1708_v3 }
 0xa5c   : > { %v1748_v31 = vmul.f32 %v2158_v24, %v1742_v26 }
 0xa5e   : > { %v1754_v32 = vadd.f32 %v2159_v29, %v1748_v31 }
 0xa60   : > { %1756 = vst.msk [vmem:[#allocation2] sm:$0xff] %vm747_vm1, %v1754_v32 }
 0xa61   : > { %1758 = vst.msk [vmem:[%s2738_s8] sm:$0xff] %vm747_vm1, %v1754_v32 }
 0xa9a   : > { %v1717_v33 = vpop.xlane.xlu0 %1716 }
 0xa9b   : > { %v1719_v34 = vmul.f32 %v1717_v33, %v2875_v30 }
 0xa9d   : > { %v1721_v35 = vadd.f32 1e-05, %v1719_v34 }
 0xa9f   : > { %2200 = vrsqrt.f32 %v1721_v35  ;;  %vm1738_vm4 = vweird.f32 %v1721_v35 }
 0xaa5   : > { %v2201_v36 = vpop.eup %2200 }
 0xaa6   : > { %v1733_v37 = vmul.f32 %v2201_v36, %v1721_v35  ;;  %vm1739_vm3 = vweird.f32 %v2201_v36 }
 0xaa7   : > { %vm1740_vm5 = vmor %vm1738_vm4, %vm1739_vm3 }
 0xaa8   : > { %v1734_v38 = vmul.f32 %v2201_v36, %v1733_v37 }
 0xaaa   : > { %v1735_v39 = vmul.f32 0.5, %v1734_v38 }
 0xaac   : > { %v1736_v40 = vsub.f32 1.5, %v1735_v39 }
 0xaae   : > { %v1737_v41 = vmul.f32 %v2201_v36, %v1736_v40 }
 0xab0   : > { %v1741_v30 = vsel %vm1740_vm5, %v2201_v36, %v1737_v41 }
 0xab1   : > { %v1743_v42 = vmul.f32 %v1741_v30, %v1709_v9 }
 0xab3   : > { %v1749_v43 = vmul.f32 %v2158_v24, %v1743_v42 }
 0xab5   : > { %v1755_v44 = vadd.f32 %v2159_v29, %v1749_v43 }
 0xab7   : > { %1757 = vst.msk [vmem:[#allocation2 + $0x8] sm:$0xff] %vm747_vm1, %v1755_v44 }
 0xab8   : > { %1759 = vst.msk [vmem:[%s2738_s8 + $0x8] sm:$0xff] %vm747_vm1, %v1755_v44 }
 0xab9   : > { %2379 = shalt.err (!%p2376_p0)
}
 0xaba   : > { %s2446_s8 = smov 128   ;;  %s2447_s14 = smov 8  }
 0xabb   : > { %2069 = dma.vmem_to_hbm [thread:$0]  (%p2597_p10), %s1774_s19, 256, %s1776_s18, %s1761_s17, %s2446_s8, %s2446_s8, %s2447_s14  }
 0xabc PF: > { %s3040_s0 = sld [smem:[#allocation16_spill]]  ;;  %p3042_p7 = scmp.ge.s32.totalorder %s2426_s16, 2 }
 0xabe   : > { %p2089_p8 = pnand %p3042_p7, %p2558_p6 }
 0xac0   : > { %p2090_p1 = pneg %p2089_p8 }
 0xac2   : > { %s1790_s13 = sand.u32 1, %s3040_s0  }
 0xac3   : > { %s1791_s12 = scalar_lea.sflag [#allocation5], %s1790_s13 }
 0xac4   : > { %2409 = dma.done.wait (%p2090_p1), %s1791_s12, 256  }
 0xac5   : > { %2411 = vsyncadd (%p2090_p1), %s1791_s12, 4294967040  ;;  %s3043_s16 = sld [smem:[#allocation19_spill]]  ;;  %s3046_s29 = smov %s2418_s30 }
 0xac6   : > { %s3044_s23 = sld [smem:[#allocation17_spill]] }
 0xac7   : > { %s3045_s15 = sld [smem:[#allocation20_spill]] }
 0xacb   : > { %p26_p9 = scmp.ge.s32.totalorder %s3043_s16, 4  }
 0xacc   : > { %s3047_s30 = smov %s3044_s23 }
 0xacd   :  { %28 = sbr.rel (!%p26_p9) target bundleno = 18 (0x12), region = 181 }
 0xad2   :  { %1797 = vsyncpa [#allocation4], 1 }
 0xad3   :  { %1799 = vsyncpa [#allocation4 + $0x1], 1 }
 0xad4   :  { %1800 = vsyncpa [#allocation7], 1 }
 0xad5   :  { %1801 = vsyncpa [#allocation5], 1 }
 0xad6   :  { %1803 = vsyncpa [#allocation5 + $0x1], 1 }

</bundles_post_ra>
